<compile_context>
chip_gen: v7x
topology: tpu7x:2x2x1
jax: 0.10.0
libtpu: 0.0.40
codegen_flags: <defaults>
</compile_context>

<pallas_src>
import jax
import jax.numpy as jnp
from jax.experimental import pallas as pl
from jax.experimental.pallas import tpu as pltpu


CONNECTION_TABLE = [
    [0, 1, 2], [1, 2, 3], [2, 3, 4], [3, 4, 5], [4, 5, 0], [5, 0, 1],
    [0, 1, 2, 3], [1, 2, 3, 4], [2, 3, 4, 5], [3, 4, 5, 0], [4, 5, 0, 1], [5, 0, 1, 2],
    [0, 1, 3, 4], [1, 2, 4, 5], [2, 3, 5, 0], [0, 1, 2, 3, 4, 5],
]


# ----------------------------- fused Pallas kernel -----------------------------

def _lenet5_kernel(x_ref, m1_ref, b2_ref, m3_ref, b4_ref, w5_ref, b5_ref,
                   w6_ref, b6_ref, rbft_ref, rbfsq_ref, o_ref):
    f32 = jnp.float32
    TB = x_ref.shape[0]

    def sigmoid(z):
        # divide goes to the EUP via approx reciprocal (review suggestion)
        return pl.reciprocal(1.0 + jnp.exp(-z), approx=True)

    # ---- C1 (5x5 conv, 1->6) fused with S2 W-pool + per-channel scale ----------
    # x: (TB, 32, 32); 5 banded matmuls, one per kernel row ki.
    x = x_ref[...]
    acc1 = jnp.zeros((TB * 28, 84), f32)                     # cols = (w_pooled, c), c fastest
    for ki in range(5):
        slab = x[:, ki:ki + 28, :].reshape(TB * 28, 32)      # rows = (b, out_row)
        acc1 = acc1 + jnp.dot(slab, m1_ref[ki], preferred_element_type=f32)
    # S2 H-pool (adjacent output rows) + folded bias + sigmoid
    a = acc1.reshape(TB * 14, 2, 84)
    s2 = sigmoid(a[:, 0, :] + a[:, 1, :] + b2_ref[...])      # (TB*14, 84): H=W=14, C=6

    # ---- C3 (sparse 5x5 conv via dense zero-masked weights) + S4 W-pool + scale -
    s2_3d = s2.reshape(TB, 14, 84)
    acc3 = jnp.zeros((TB * 10, 80), f32)                     # cols = (w_pooled, c), C=16
    for ki in range(5):
        slab = s2_3d[:, ki:ki + 10, :].reshape(TB * 10, 84)
        acc3 = acc3 + jnp.dot(slab, m3_ref[ki], preferred_element_type=f32)
    a = acc3.reshape(TB * 5, 2, 80)
    s4 = sigmoid(a[:, 0, :] + a[:, 1, :] + b4_ref[...])      # (TB*5, 80): H=W=5, C=16

    # ---- C5: 5x5 conv on a 5x5 map == FC(400 -> 120), as 5 row-matmuls ---------
    s4_3d = s4.reshape(TB, 5, 80)
    acc5 = jnp.zeros((TB, 120), f32)
    for h in range(5):
        acc5 = acc5 + jnp.dot(s4_3d[:, h, :], w5_ref[h], preferred_element_type=f32)
    c5 = acc5 + b5_ref[...]                                  # (TB, 120)

    # ---- F6 + 1.7159 * tanh(2/3 * z) -------------------------------------------
    f6 = jnp.dot(c5, w6_ref[...], preferred_element_type=f32) + b6_ref[...]
    f6 = 1.7159 * jnp.tanh(f6 * (2.0 / 3.0))                 # (TB, 84)

    # ---- Output layer: ||x - r||^2 = ||x||^2 - 2 x.r + ||r||^2  (MXU matmul) ---
    xsq = jnp.sum(f6 * f6, axis=-1, keepdims=True)           # (TB, 1)
    o_ref[...] = xsq - 2.0 * jnp.dot(f6, rbft_ref[...],
                                     preferred_element_type=f32) + rbfsq_ref[...]


# ----------------------------- trace-time weight folding -----------------------

def _band_matrix(w_tap, w_in, w_out):
    """w_tap: (k, cin, cout) -> A: (w_in*cin, w_out*cout) with
    A[wj*cin + ci, wo*cout + co] = w_tap[wj - wo, ci, co] if 0 <= wj - wo < k else 0."""
    k, cin, cout = w_tap.shape
    d = jnp.arange(w_in)[:, None] - jnp.arange(w_out)[None, :]        # (w_in, w_out)
    valid = (d >= 0) & (d < k)
    vals = jnp.take(w_tap, jnp.clip(d, 0, k - 1), axis=0)             # (w_in, w_out, cin, cout)
    vals = jnp.where(valid[:, :, None, None], vals, 0.0)
    return jnp.transpose(vals, (0, 2, 1, 3)).reshape(w_in * cin, w_out * cout)


def _pool_scale_matrix(w_out, c, scale):
    """Q: (w_out*c, (w_out//2)*c) summing width pairs and scaling per channel."""
    wp = w_out // 2
    sel = (jnp.arange(w_out)[:, None] // 2 == jnp.arange(wp)[None, :]).astype(jnp.float32)
    diag = jnp.eye(c, dtype=jnp.float32) * scale[None, :]
    q = sel[:, None, :, None] * diag[None, :, None, :]                # (w_out, c, wp, c)
    return q.reshape(w_out * c, wp * c)


def _fold_params(p):
    w1, b1, w3, b3 = p["w1"], p["b1"], p["w3"], p["b3"]
    w5, b5, w6, b6 = p["w5"], p["b5"], p["w6"], p["b6"]
    s2w, s2b, s4w, s4b = p["s2_w"], p["s2_b"], p["s4_w"], p["s4_b"]
    rbf = p["rbf"]

    # C1 + (S2 width-pool * scale): banded matmul weights, one per kernel row.
    q2 = _pool_scale_matrix(28, 6, s2w)                               # (168, 84)
    w1_t = jnp.transpose(w1, (2, 3, 1, 0))                            # (ki, kj, cin=1, cout=6)
    m1 = jnp.stack([_band_matrix(w1_t[ki], 32, 28) @ q2 for ki in range(5)])   # (5, 32, 84)
    bias2 = jnp.tile(s2w * 4.0 * b1 + s2b, 14).reshape(1, 84)

    # C3 + (S4 width-pool * scale); w3 is already dense, zero-masked per the table.
    q4 = _pool_scale_matrix(10, 16, s4w)                              # (160, 80)
    w3_t = jnp.transpose(w3, (2, 3, 1, 0))                            # (ki, kj, cin=6, cout=16)
    m3 = jnp.stack([_band_matrix(w3_t[ki], 14, 10) @ q4 for ki in range(5)])   # (5, 84, 80)
    bias4 = jnp.tile(s4w * 4.0 * b3 + s4b, 5).reshape(1, 80)

    # C5 as 5 (80 -> 120) matmuls (one per kernel row); cols of s4 are (w, cin).
    w5f = jnp.transpose(w5, (2, 3, 1, 0)).reshape(5, 80, 120)

    return dict(
        m1=m1, bias2=bias2, m3=m3, bias4=bias4,
        w5f=w5f, b5=b5.reshape(1, 120),
        w6t=jnp.transpose(w6, (1, 0)), b6=b6.reshape(1, 84),
        rbft=jnp.transpose(rbf, (1, 0)),
        rbfsq=jnp.sum(rbf * rbf, axis=1).reshape(1, 10),
    )


# ----------------------------- wrapper -----------------------------------------

def lenet5_forward(params, imgs_nchw, *, tile_b=8):
    """imgs_nchw: (b, 1, 32, 32) float32 -> (b, 10) float32."""
    B = imgs_nchw.shape[0]
    x = imgs_nchw.astype(jnp.float32).reshape(B, 32, 32)
    fp = _fold_params(params)   # tiny; hoist out of the jit in real deployments

    TB = min(tile_b, B)
    B_pad = ((B + TB - 1) // TB) * TB
    if B_pad != B:
        x = jnp.pad(x, ((0, B_pad - B), (0, 0), (0, 0)))

    def const_spec(shape):
        return pl.BlockSpec(shape, lambda i, _n=len(shape): (0,) * _n)

    out = pl.pallas_call(
        _lenet5_kernel,
        out_shape=jax.ShapeDtypeStruct((B_pad, 10), jnp.float32),
        grid=(B_pad // TB,),
        in_specs=[
            pl.BlockSpec((TB, 32, 32), lambda i: (i, 0, 0)),   # image tile
            const_spec((5, 32, 84)),                           # m1
            const_spec((1, 84)),                               # bias2
            const_spec((5, 84, 80)),                           # m3
            const_spec((1, 80)),                               # bias4
            const_spec((5, 80, 120)),                          # w5f
            const_spec((1, 120)),                              # b5
            const_spec((120, 84)),                             # w6t
            const_spec((1, 84)),                               # b6
            const_spec((84, 10)),                              # rbf^T
            const_spec((1, 10)),                               # ||rbf||^2
        ],
        out_specs=pl.BlockSpec((TB, 10), lambda i: (i, 0)),
        compiler_params=pltpu.CompilerParams(dimension_semantics=("parallel",)),
    )(x, fp["m1"], fp["bias2"], fp["m3"], fp["bias4"], fp["w5f"], fp["b5"],
      fp["w6t"], fp["b6"], fp["rbft"], fp["rbfsq"])

    return out[:B]


# ----------------------------- init + pure-JAX reference -----------------------

def init_params(key):
    ks = jax.random.split(key, 9)

    def u(k, shape, scale):
        return jax.random.uniform(k, shape, jnp.float32, -scale, scale)

    w1, b1 = u(ks[0], (6, 1, 5, 5), 0.2), u(ks[1], (6,), 0.2)
    w3 = u(ks[2], (16, 6, 5, 5), 0.2)
    mask = jnp.zeros((16, 6), jnp.float32)
    for o, cs in enumerate(CONNECTION_TABLE):
        for c in cs:
            mask = mask.at[o, c].set(1.0)
    w3 = w3 * mask[:, :, None, None]          # sparse connection table as zero-masked dense conv
    b3 = u(ks[3], (16,), 0.2)
    w5, b5 = u(ks[4], (120, 16, 5, 5), 0.05), u(ks[5], (120,), 0.05)
    w6, b6 = u(ks[6], (84, 120), 0.1), u(ks[7], (84,), 0.1)
    rbf = jnp.where(jax.random.bernoulli(ks[8], 0.5, (10, 84)), 1.0, -1.0).astype(jnp.float32)
    return {"w1": w1, "b1": b1,
            "s2_w": jnp.ones((6,), jnp.float32), "s2_b": jnp.zeros((6,), jnp.float32),
            "w3": w3, "b3": b3,
            "s4_w": jnp.ones((16,), jnp.float32), "s4_b": jnp.zeros((16,), jnp.float32),
            "w5": w5, "b5": b5, "w6": w6, "b6": b6, "rbf": rbf}


def _avgpool4_affine(y, w, b):
    B, C, H, W = y.shape
    s = y.reshape(B, C, H // 2, 2, W // 2, 2).sum(axis=(3, 5))
    return w[None, :, None, None] * s + b[None, :, None, None]


def lenet5_reference(params, imgs):
    dn = ("NCHW", "OIHW", "NCHW")
    x = imgs.astype(jnp.float32)
    y = jax.lax.conv_general_dilated(x, params["w1"], (1, 1), "VALID", dimension_numbers=dn)
    y = y + params["b1"][None, :, None, None]
    y = jax.nn.sigmoid(_avgpool4_affine(y, params["s2_w"], params["s2_b"]))
    y = jax.lax.conv_general_dilated(y, params["w3"], (1, 1), "VALID", dimension_numbers=dn)
    y = y + params["b3"][None, :, None, None]
    y = jax.nn.sigmoid(_avgpool4_affine(y, params["s4_w"], params["s4_b"]))
    y = jax.lax.conv_general_dilated(y, params["w5"], (1, 1), "VALID", dimension_numbers=dn)
    y = y + params["b5"][None, :, None, None]
    y = y.reshape(y.shape[0], -1)
    y = y @ params["w6"].T + params["b6"]
    y = 1.7159 * jnp.tanh(y * (2.0 / 3.0))
    d = y[:, None, :] - params["rbf"][None, :, :]
    return jnp.sum(d * d, axis=2)


if __name__ == "__main__":
    key = jax.random.PRNGKey(0)
    pkey, xkey = jax.random.split(key)
    params = init_params(pkey)
    imgs = jax.random.normal(xkey, (2, 1, 32, 32), jnp.float32)

    fwd = jax.jit(lenet5_forward)
    out = fwd(params, imgs)
    jax.block_until_ready(out)
    assert out.shape == (2, 10) and out.dtype == jnp.float32

    ref = lenet5_reference(params, imgs)
    rel_err = float(jnp.max(jnp.abs(out - ref)) / (jnp.max(jnp.abs(ref)) + 1e-6))
    assert rel_err < 2e-2, f"mismatch vs reference: rel_err={rel_err}"

    print("KERNEL_OK")
</pallas_src>

<mosaic_0001>
module attributes {stable_mosaic.version = 11 : i64} {
  func.func @_lenet5_kernel(%arg0: i32, %arg1: memref<2x32x32xf32, #tpu.memory_space<vmem>>, %arg2: memref<5x32x84xf32, #tpu.memory_space<vmem>>, %arg3: memref<1x84xf32, #tpu.memory_space<vmem>>, %arg4: memref<5x84x80xf32, #tpu.memory_space<vmem>>, %arg5: memref<1x80xf32, #tpu.memory_space<vmem>>, %arg6: memref<5x80x120xf32, #tpu.memory_space<vmem>>, %arg7: memref<1x120xf32, #tpu.memory_space<vmem>>, %arg8: memref<120x84xf32, #tpu.memory_space<vmem>>, %arg9: memref<1x84xf32, #tpu.memory_space<vmem>>, %arg10: memref<84x10xf32, #tpu.memory_space<vmem>>, %arg11: memref<1x10xf32, #tpu.memory_space<vmem>>, %arg12: memref<2x10xf32, #tpu.memory_space<vmem>>) attributes {dimension_semantics = [#tpu.dimension_semantics<parallel>], iteration_bounds = array<i64: 1>, scalar_prefetch = 0 : i64, scratch_operands = 0 : i64, tpu.core_type = #tpu.core_type<tc>, window_params = [{transform_indices = @transform_0, window_bounds = array<i64: 2, 32, 32>}, {pipeline_mode = #tpu.pipeline_mode<synchronous>, transform_indices = @transform_1, window_bounds = array<i64: 5, 32, 84>}, {pipeline_mode = #tpu.pipeline_mode<synchronous>, transform_indices = @transform_2, window_bounds = array<i64: 1, 84>}, {pipeline_mode = #tpu.pipeline_mode<synchronous>, transform_indices = @transform_3, window_bounds = array<i64: 5, 84, 80>}, {pipeline_mode = #tpu.pipeline_mode<synchronous>, transform_indices = @transform_4, window_bounds = array<i64: 1, 80>}, {pipeline_mode = #tpu.pipeline_mode<synchronous>, transform_indices = @transform_5, window_bounds = array<i64: 5, 80, 120>}, {pipeline_mode = #tpu.pipeline_mode<synchronous>, transform_indices = @transform_6, window_bounds = array<i64: 1, 120>}, {pipeline_mode = #tpu.pipeline_mode<synchronous>, transform_indices = @transform_7, window_bounds = array<i64: 120, 84>}, {pipeline_mode = #tpu.pipeline_mode<synchronous>, transform_indices = @transform_8, window_bounds = array<i64: 1, 84>}, {pipeline_mode = #tpu.pipeline_mode<synchronous>, transform_indices = @transform_9, window_bounds = array<i64: 84, 10>}, {pipeline_mode = #tpu.pipeline_mode<synchronous>, transform_indices = @transform_10, window_bounds = array<i64: 1, 10>}, {transform_indices = @transform_11, window_bounds = array<i64: 2, 10>}]} {
    %c0 = arith.constant 0 : index
    %c0_0 = arith.constant 0 : index
    %c0_1 = arith.constant 0 : index
    %0 = vector.load %arg1[%c0, %c0_0, %c0_1] : memref<2x32x32xf32, #tpu.memory_space<vmem>>, vector<2x32x32xf32>
    %cst = arith.constant 0.000000e+00 : f32
    %1 = vector.broadcast %cst : f32 to vector<56x84xf32>
    %2 = vector.extract_strided_slice %0 {offsets = [0, 0, 0], sizes = [2, 28, 32], strides = [1, 1, 1]} : vector<2x32x32xf32> to vector<2x28x32xf32>
    %3 = vector.shape_cast %2 : vector<2x28x32xf32> to vector<56x32xf32>
    %c0_2 = arith.constant 0 : index
    %c0_3 = arith.constant 0 : index
    %c0_4 = arith.constant 0 : index
    %4 = vector.load %arg2[%c0_2, %c0_3, %c0_4] : memref<5x32x84xf32, #tpu.memory_space<vmem>>, vector<1x32x84xf32>
    %5 = vector.shape_cast %4 : vector<1x32x84xf32> to vector<32x84xf32>
    %cst_5 = arith.constant dense<0.000000e+00> : vector<56x84xf32>
    %6 = tpu.matmul %3, %5, %cst_5 {dimension_numbers = #tpu.dot_dimension_numbers<[1], [0], [0], [1], [0, 0, 1, 1], [], []>} : vector<56x32xf32>, vector<32x84xf32>, vector<56x84xf32> -> vector<56x84xf32>
    %7 = arith.addf %1, %6 : vector<56x84xf32>
    %8 = vector.extract_strided_slice %0 {offsets = [0, 1, 0], sizes = [2, 28, 32], strides = [1, 1, 1]} : vector<2x32x32xf32> to vector<2x28x32xf32>
    %9 = vector.shape_cast %8 : vector<2x28x32xf32> to vector<56x32xf32>
    %c1 = arith.constant 1 : index
    %c0_6 = arith.constant 0 : index
    %c0_7 = arith.constant 0 : index
    %10 = vector.load %arg2[%c1, %c0_6, %c0_7] : memref<5x32x84xf32, #tpu.memory_space<vmem>>, vector<1x32x84xf32>
    %11 = vector.shape_cast %10 : vector<1x32x84xf32> to vector<32x84xf32>
    %cst_8 = arith.constant dense<0.000000e+00> : vector<56x84xf32>
    %12 = tpu.matmul %9, %11, %cst_8 {dimension_numbers = #tpu.dot_dimension_numbers<[1], [0], [0], [1], [0, 0, 1, 1], [], []>} : vector<56x32xf32>, vector<32x84xf32>, vector<56x84xf32> -> vector<56x84xf32>
    %13 = arith.addf %7, %12 : vector<56x84xf32>
    %14 = vector.extract_strided_slice %0 {offsets = [0, 2, 0], sizes = [2, 28, 32], strides = [1, 1, 1]} : vector<2x32x32xf32> to vector<2x28x32xf32>
    %15 = vector.shape_cast %14 : vector<2x28x32xf32> to vector<56x32xf32>
    %c2 = arith.constant 2 : index
    %c0_9 = arith.constant 0 : index
    %c0_10 = arith.constant 0 : index
    %16 = vector.load %arg2[%c2, %c0_9, %c0_10] : memref<5x32x84xf32, #tpu.memory_space<vmem>>, vector<1x32x84xf32>
    %17 = vector.shape_cast %16 : vector<1x32x84xf32> to vector<32x84xf32>
    %cst_11 = arith.constant dense<0.000000e+00> : vector<56x84xf32>
    %18 = tpu.matmul %15, %17, %cst_11 {dimension_numbers = #tpu.dot_dimension_numbers<[1], [0], [0], [1], [0, 0, 1, 1], [], []>} : vector<56x32xf32>, vector<32x84xf32>, vector<56x84xf32> -> vector<56x84xf32>
    %19 = arith.addf %13, %18 : vector<56x84xf32>
    %20 = vector.extract_strided_slice %0 {offsets = [0, 3, 0], sizes = [2, 28, 32], strides = [1, 1, 1]} : vector<2x32x32xf32> to vector<2x28x32xf32>
    %21 = vector.shape_cast %20 : vector<2x28x32xf32> to vector<56x32xf32>
    %c3 = arith.constant 3 : index
    %c0_12 = arith.constant 0 : index
    %c0_13 = arith.constant 0 : index
    %22 = vector.load %arg2[%c3, %c0_12, %c0_13] : memref<5x32x84xf32, #tpu.memory_space<vmem>>, vector<1x32x84xf32>
    %23 = vector.shape_cast %22 : vector<1x32x84xf32> to vector<32x84xf32>
    %cst_14 = arith.constant dense<0.000000e+00> : vector<56x84xf32>
    %24 = tpu.matmul %21, %23, %cst_14 {dimension_numbers = #tpu.dot_dimension_numbers<[1], [0], [0], [1], [0, 0, 1, 1], [], []>} : vector<56x32xf32>, vector<32x84xf32>, vector<56x84xf32> -> vector<56x84xf32>
    %25 = arith.addf %19, %24 : vector<56x84xf32>
    %26 = vector.extract_strided_slice %0 {offsets = [0, 4, 0], sizes = [2, 28, 32], strides = [1, 1, 1]} : vector<2x32x32xf32> to vector<2x28x32xf32>
    %27 = vector.shape_cast %26 : vector<2x28x32xf32> to vector<56x32xf32>
    %c4 = arith.constant 4 : index
    %c0_15 = arith.constant 0 : index
    %c0_16 = arith.constant 0 : index
    %28 = vector.load %arg2[%c4, %c0_15, %c0_16] : memref<5x32x84xf32, #tpu.memory_space<vmem>>, vector<1x32x84xf32>
    %29 = vector.shape_cast %28 : vector<1x32x84xf32> to vector<32x84xf32>
    %cst_17 = arith.constant dense<0.000000e+00> : vector<56x84xf32>
    %30 = tpu.matmul %27, %29, %cst_17 {dimension_numbers = #tpu.dot_dimension_numbers<[1], [0], [0], [1], [0, 0, 1, 1], [], []>} : vector<56x32xf32>, vector<32x84xf32>, vector<56x84xf32> -> vector<56x84xf32>
    %31 = arith.addf %25, %30 : vector<56x84xf32>
    %32 = vector.shape_cast %31 : vector<56x84xf32> to vector<28x2x84xf32>
    %33 = vector.extract_strided_slice %32 {offsets = [0, 0, 0], sizes = [28, 1, 84], strides = [1, 1, 1]} : vector<28x2x84xf32> to vector<28x1x84xf32>
    %34 = vector.shape_cast %33 : vector<28x1x84xf32> to vector<28x84xf32>
    %35 = vector.extract_strided_slice %32 {offsets = [0, 1, 0], sizes = [28, 1, 84], strides = [1, 1, 1]} : vector<28x2x84xf32> to vector<28x1x84xf32>
    %36 = vector.shape_cast %35 : vector<28x1x84xf32> to vector<28x84xf32>
    %37 = arith.addf %34, %36 : vector<28x84xf32>
    %c0_18 = arith.constant 0 : index
    %c0_19 = arith.constant 0 : index
    %38 = vector.load %arg3[%c0_18, %c0_19] : memref<1x84xf32, #tpu.memory_space<vmem>>, vector<1x84xf32>
    %39 = vector.broadcast %38 : vector<1x84xf32> to vector<28x84xf32>
    %40 = arith.addf %37, %39 : vector<28x84xf32>
    %cst_20 = arith.constant 0.000000e+00 : f32
    %41 = vector.broadcast %cst_20 : f32 to vector<28x84xf32>
    %42 = arith.subf %41, %40 : vector<28x84xf32>
    %43 = math.exp %42 : vector<28x84xf32>
    %cst_21 = arith.constant 1.000000e+00 : f32
    %44 = vector.broadcast %cst_21 : f32 to vector<28x84xf32>
    %45 = arith.addf %44, %43 : vector<28x84xf32>
    %46 = tpu.reciprocal %45 {approx = true} : vector<28x84xf32> -> vector<28x84xf32>
    %47 = vector.shape_cast %46 : vector<28x84xf32> to vector<2x14x84xf32>
    %cst_22 = arith.constant 0.000000e+00 : f32
    %48 = vector.broadcast %cst_22 : f32 to vector<20x80xf32>
    %49 = vector.extract_strided_slice %47 {offsets = [0, 0, 0], sizes = [2, 10, 84], strides = [1, 1, 1]} : vector<2x14x84xf32> to vector<2x10x84xf32>
    %50 = vector.shape_cast %49 : vector<2x10x84xf32> to vector<20x84xf32>
    %c0_23 = arith.constant 0 : index
    %c0_24 = arith.constant 0 : index
    %c0_25 = arith.constant 0 : index
    %51 = vector.load %arg4[%c0_23, %c0_24, %c0_25] : memref<5x84x80xf32, #tpu.memory_space<vmem>>, vector<1x84x80xf32>
    %52 = vector.shape_cast %51 : vector<1x84x80xf32> to vector<84x80xf32>
    %cst_26 = arith.constant dense<0.000000e+00> : vector<20x80xf32>
    %53 = tpu.matmul %50, %52, %cst_26 {dimension_numbers = #tpu.dot_dimension_numbers<[1], [0], [0], [1], [0, 0, 1, 1], [], []>} : vector<20x84xf32>, vector<84x80xf32>, vector<20x80xf32> -> vector<20x80xf32>
    %54 = arith.addf %48, %53 : vector<20x80xf32>
    %55 = vector.extract_strided_slice %47 {offsets = [0, 1, 0], sizes = [2, 10, 84], strides = [1, 1, 1]} : vector<2x14x84xf32> to vector<2x10x84xf32>
    %56 = vector.shape_cast %55 : vector<2x10x84xf32> to vector<20x84xf32>
    %c1_27 = arith.constant 1 : index
    %c0_28 = arith.constant 0 : index
    %c0_29 = arith.constant 0 : index
    %57 = vector.load %arg4[%c1_27, %c0_28, %c0_29] : memref<5x84x80xf32, #tpu.memory_space<vmem>>, vector<1x84x80xf32>
    %58 = vector.shape_cast %57 : vector<1x84x80xf32> to vector<84x80xf32>
    %cst_30 = arith.constant dense<0.000000e+00> : vector<20x80xf32>
    %59 = tpu.matmul %56, %58, %cst_30 {dimension_numbers = #tpu.dot_dimension_numbers<[1], [0], [0], [1], [0, 0, 1, 1], [], []>} : vector<20x84xf32>, vector<84x80xf32>, vector<20x80xf32> -> vector<20x80xf32>
    %60 = arith.addf %54, %59 : vector<20x80xf32>
    %61 = vector.extract_strided_slice %47 {offsets = [0, 2, 0], sizes = [2, 10, 84], strides = [1, 1, 1]} : vector<2x14x84xf32> to vector<2x10x84xf32>
    %62 = vector.shape_cast %61 : vector<2x10x84xf32> to vector<20x84xf32>
    %c2_31 = arith.constant 2 : index
    %c0_32 = arith.constant 0 : index
    %c0_33 = arith.constant 0 : index
    %63 = vector.load %arg4[%c2_31, %c0_32, %c0_33] : memref<5x84x80xf32, #tpu.memory_space<vmem>>, vector<1x84x80xf32>
    %64 = vector.shape_cast %63 : vector<1x84x80xf32> to vector<84x80xf32>
    %cst_34 = arith.constant dense<0.000000e+00> : vector<20x80xf32>
    %65 = tpu.matmul %62, %64, %cst_34 {dimension_numbers = #tpu.dot_dimension_numbers<[1], [0], [0], [1], [0, 0, 1, 1], [], []>} : vector<20x84xf32>, vector<84x80xf32>, vector<20x80xf32> -> vector<20x80xf32>
    %66 = arith.addf %60, %65 : vector<20x80xf32>
    %67 = vector.extract_strided_slice %47 {offsets = [0, 3, 0], sizes = [2, 10, 84], strides = [1, 1, 1]} : vector<2x14x84xf32> to vector<2x10x84xf32>
    %68 = vector.shape_cast %67 : vector<2x10x84xf32> to vector<20x84xf32>
    %c3_35 = arith.constant 3 : index
    %c0_36 = arith.constant 0 : index
    %c0_37 = arith.constant 0 : index
    %69 = vector.load %arg4[%c3_35, %c0_36, %c0_37] : memref<5x84x80xf32, #tpu.memory_space<vmem>>, vector<1x84x80xf32>
    %70 = vector.shape_cast %69 : vector<1x84x80xf32> to vector<84x80xf32>
    %cst_38 = arith.constant dense<0.000000e+00> : vector<20x80xf32>
    %71 = tpu.matmul %68, %70, %cst_38 {dimension_numbers = #tpu.dot_dimension_numbers<[1], [0], [0], [1], [0, 0, 1, 1], [], []>} : vector<20x84xf32>, vector<84x80xf32>, vector<20x80xf32> -> vector<20x80xf32>
    %72 = arith.addf %66, %71 : vector<20x80xf32>
    %73 = vector.extract_strided_slice %47 {offsets = [0, 4, 0], sizes = [2, 10, 84], strides = [1, 1, 1]} : vector<2x14x84xf32> to vector<2x10x84xf32>
    %74 = vector.shape_cast %73 : vector<2x10x84xf32> to vector<20x84xf32>
    %c4_39 = arith.constant 4 : index
    %c0_40 = arith.constant 0 : index
    %c0_41 = arith.constant 0 : index
    %75 = vector.load %arg4[%c4_39, %c0_40, %c0_41] : memref<5x84x80xf32, #tpu.memory_space<vmem>>, vector<1x84x80xf32>
    %76 = vector.shape_cast %75 : vector<1x84x80xf32> to vector<84x80xf32>
    %cst_42 = arith.constant dense<0.000000e+00> : vector<20x80xf32>
    %77 = tpu.matmul %74, %76, %cst_42 {dimension_numbers = #tpu.dot_dimension_numbers<[1], [0], [0], [1], [0, 0, 1, 1], [], []>} : vector<20x84xf32>, vector<84x80xf32>, vector<20x80xf32> -> vector<20x80xf32>
    %78 = arith.addf %72, %77 : vector<20x80xf32>
    %79 = vector.shape_cast %78 : vector<20x80xf32> to vector<10x2x80xf32>
    %80 = vector.extract_strided_slice %79 {offsets = [0, 0, 0], sizes = [10, 1, 80], strides = [1, 1, 1]} : vector<10x2x80xf32> to vector<10x1x80xf32>
    %81 = vector.shape_cast %80 : vector<10x1x80xf32> to vector<10x80xf32>
    %82 = vector.extract_strided_slice %79 {offsets = [0, 1, 0], sizes = [10, 1, 80], strides = [1, 1, 1]} : vector<10x2x80xf32> to vector<10x1x80xf32>
    %83 = vector.shape_cast %82 : vector<10x1x80xf32> to vector<10x80xf32>
    %84 = arith.addf %81, %83 : vector<10x80xf32>
    %c0_43 = arith.constant 0 : index
    %c0_44 = arith.constant 0 : index
    %85 = vector.load %arg5[%c0_43, %c0_44] : memref<1x80xf32, #tpu.memory_space<vmem>>, vector<1x80xf32>
    %86 = vector.broadcast %85 : vector<1x80xf32> to vector<10x80xf32>
    %87 = arith.addf %84, %86 : vector<10x80xf32>
    %cst_45 = arith.constant 0.000000e+00 : f32
    %88 = vector.broadcast %cst_45 : f32 to vector<10x80xf32>
    %89 = arith.subf %88, %87 : vector<10x80xf32>
    %90 = math.exp %89 : vector<10x80xf32>
    %cst_46 = arith.constant 1.000000e+00 : f32
    %91 = vector.broadcast %cst_46 : f32 to vector<10x80xf32>
    %92 = arith.addf %91, %90 : vector<10x80xf32>
    %93 = tpu.reciprocal %92 {approx = true} : vector<10x80xf32> -> vector<10x80xf32>
    %94 = vector.shape_cast %93 : vector<10x80xf32> to vector<2x5x80xf32>
    %cst_47 = arith.constant 0.000000e+00 : f32
    %95 = vector.broadcast %cst_47 : f32 to vector<2x120xf32>
    %96 = vector.extract_strided_slice %94 {offsets = [0, 0, 0], sizes = [2, 1, 80], strides = [1, 1, 1]} : vector<2x5x80xf32> to vector<2x1x80xf32>
    %97 = vector.shape_cast %96 : vector<2x1x80xf32> to vector<2x80xf32>
    %c0_48 = arith.constant 0 : index
    %c0_49 = arith.constant 0 : index
    %c0_50 = arith.constant 0 : index
    %98 = vector.load %arg6[%c0_48, %c0_49, %c0_50] : memref<5x80x120xf32, #tpu.memory_space<vmem>>, vector<1x80x120xf32>
    %99 = vector.shape_cast %98 : vector<1x80x120xf32> to vector<80x120xf32>
    %cst_51 = arith.constant dense<0.000000e+00> : vector<2x120xf32>
    %100 = tpu.matmul %97, %99, %cst_51 {dimension_numbers = #tpu.dot_dimension_numbers<[1], [0], [0], [1], [0, 0, 1, 1], [], []>} : vector<2x80xf32>, vector<80x120xf32>, vector<2x120xf32> -> vector<2x120xf32>
    %101 = arith.addf %95, %100 : vector<2x120xf32>
    %102 = vector.extract_strided_slice %94 {offsets = [0, 1, 0], sizes = [2, 1, 80], strides = [1, 1, 1]} : vector<2x5x80xf32> to vector<2x1x80xf32>
    %103 = vector.shape_cast %102 : vector<2x1x80xf32> to vector<2x80xf32>
    %c1_52 = arith.constant 1 : index
    %c0_53 = arith.constant 0 : index
    %c0_54 = arith.constant 0 : index
    %104 = vector.load %arg6[%c1_52, %c0_53, %c0_54] : memref<5x80x120xf32, #tpu.memory_space<vmem>>, vector<1x80x120xf32>
    %105 = vector.shape_cast %104 : vector<1x80x120xf32> to vector<80x120xf32>
    %cst_55 = arith.constant dense<0.000000e+00> : vector<2x120xf32>
    %106 = tpu.matmul %103, %105, %cst_55 {dimension_numbers = #tpu.dot_dimension_numbers<[1], [0], [0], [1], [0, 0, 1, 1], [], []>} : vector<2x80xf32>, vector<80x120xf32>, vector<2x120xf32> -> vector<2x120xf32>
    %107 = arith.addf %101, %106 : vector<2x120xf32>
    %108 = vector.extract_strided_slice %94 {offsets = [0, 2, 0], sizes = [2, 1, 80], strides = [1, 1, 1]} : vector<2x5x80xf32> to vector<2x1x80xf32>
    %109 = vector.shape_cast %108 : vector<2x1x80xf32> to vector<2x80xf32>
    %c2_56 = arith.constant 2 : index
    %c0_57 = arith.constant 0 : index
    %c0_58 = arith.constant 0 : index
    %110 = vector.load %arg6[%c2_56, %c0_57, %c0_58] : memref<5x80x120xf32, #tpu.memory_space<vmem>>, vector<1x80x120xf32>
    %111 = vector.shape_cast %110 : vector<1x80x120xf32> to vector<80x120xf32>
    %cst_59 = arith.constant dense<0.000000e+00> : vector<2x120xf32>
    %112 = tpu.matmul %109, %111, %cst_59 {dimension_numbers = #tpu.dot_dimension_numbers<[1], [0], [0], [1], [0, 0, 1, 1], [], []>} : vector<2x80xf32>, vector<80x120xf32>, vector<2x120xf32> -> vector<2x120xf32>
    %113 = arith.addf %107, %112 : vector<2x120xf32>
    %114 = vector.extract_strided_slice %94 {offsets = [0, 3, 0], sizes = [2, 1, 80], strides = [1, 1, 1]} : vector<2x5x80xf32> to vector<2x1x80xf32>
    %115 = vector.shape_cast %114 : vector<2x1x80xf32> to vector<2x80xf32>
    %c3_60 = arith.constant 3 : index
    %c0_61 = arith.constant 0 : index
    %c0_62 = arith.constant 0 : index
    %116 = vector.load %arg6[%c3_60, %c0_61, %c0_62] : memref<5x80x120xf32, #tpu.memory_space<vmem>>, vector<1x80x120xf32>
    %117 = vector.shape_cast %116 : vector<1x80x120xf32> to vector<80x120xf32>
    %cst_63 = arith.constant dense<0.000000e+00> : vector<2x120xf32>
    %118 = tpu.matmul %115, %117, %cst_63 {dimension_numbers = #tpu.dot_dimension_numbers<[1], [0], [0], [1], [0, 0, 1, 1], [], []>} : vector<2x80xf32>, vector<80x120xf32>, vector<2x120xf32> -> vector<2x120xf32>
    %119 = arith.addf %113, %118 : vector<2x120xf32>
    %120 = vector.extract_strided_slice %94 {offsets = [0, 4, 0], sizes = [2, 1, 80], strides = [1, 1, 1]} : vector<2x5x80xf32> to vector<2x1x80xf32>
    %121 = vector.shape_cast %120 : vector<2x1x80xf32> to vector<2x80xf32>
    %c4_64 = arith.constant 4 : index
    %c0_65 = arith.constant 0 : index
    %c0_66 = arith.constant 0 : index
    %122 = vector.load %arg6[%c4_64, %c0_65, %c0_66] : memref<5x80x120xf32, #tpu.memory_space<vmem>>, vector<1x80x120xf32>
    %123 = vector.shape_cast %122 : vector<1x80x120xf32> to vector<80x120xf32>
    %cst_67 = arith.constant dense<0.000000e+00> : vector<2x120xf32>
    %124 = tpu.matmul %121, %123, %cst_67 {dimension_numbers = #tpu.dot_dimension_numbers<[1], [0], [0], [1], [0, 0, 1, 1], [], []>} : vector<2x80xf32>, vector<80x120xf32>, vector<2x120xf32> -> vector<2x120xf32>
    %125 = arith.addf %119, %124 : vector<2x120xf32>
    %c0_68 = arith.constant 0 : index
    %c0_69 = arith.constant 0 : index
    %126 = vector.load %arg7[%c0_68, %c0_69] : memref<1x120xf32, #tpu.memory_space<vmem>>, vector<1x120xf32>
    %127 = vector.broadcast %126 : vector<1x120xf32> to vector<2x120xf32>
    %128 = arith.addf %125, %127 : vector<2x120xf32>
    %c0_70 = arith.constant 0 : index
    %c0_71 = arith.constant 0 : index
    %129 = vector.load %arg8[%c0_70, %c0_71] : memref<120x84xf32, #tpu.memory_space<vmem>>, vector<120x84xf32>
    %cst_72 = arith.constant dense<0.000000e+00> : vector<2x84xf32>
    %130 = tpu.matmul %128, %129, %cst_72 {dimension_numbers = #tpu.dot_dimension_numbers<[1], [0], [0], [1], [0, 0, 1, 1], [], []>} : vector<2x120xf32>, vector<120x84xf32>, vector<2x84xf32> -> vector<2x84xf32>
    %c0_73 = arith.constant 0 : index
    %c0_74 = arith.constant 0 : index
    %131 = vector.load %arg9[%c0_73, %c0_74] : memref<1x84xf32, #tpu.memory_space<vmem>>, vector<1x84xf32>
    %132 = vector.broadcast %131 : vector<1x84xf32> to vector<2x84xf32>
    %133 = arith.addf %130, %132 : vector<2x84xf32>
    %cst_75 = arith.constant 0.666666686 : f32
    %134 = vector.broadcast %cst_75 : f32 to vector<2x84xf32>
    %135 = arith.mulf %133, %134 : vector<2x84xf32>
    %136 = math.tanh %135 : vector<2x84xf32>
    %cst_76 = arith.constant 1.715900e+00 : f32
    %137 = vector.broadcast %cst_76 : f32 to vector<2x84xf32>
    %138 = arith.mulf %137, %136 : vector<2x84xf32>
    %139 = arith.mulf %138, %138 : vector<2x84xf32>
    %cst_77 = arith.constant dense<0.000000e+00> : vector<2xf32>
    %140 = vector.multi_reduction <add>, %139, %cst_77 [1] : vector<2x84xf32> to vector<2xf32>
    %141 = vector.shape_cast %140 : vector<2xf32> to vector<2x1xf32>
    %c0_78 = arith.constant 0 : index
    %c0_79 = arith.constant 0 : index
    %142 = vector.load %arg10[%c0_78, %c0_79] : memref<84x10xf32, #tpu.memory_space<vmem>>, vector<84x10xf32>
    %cst_80 = arith.constant dense<0.000000e+00> : vector<2x10xf32>
    %143 = tpu.matmul %138, %142, %cst_80 {dimension_numbers = #tpu.dot_dimension_numbers<[1], [0], [0], [1], [0, 0, 1, 1], [], []>} : vector<2x84xf32>, vector<84x10xf32>, vector<2x10xf32> -> vector<2x10xf32>
    %cst_81 = arith.constant 2.000000e+00 : f32
    %144 = vector.broadcast %cst_81 : f32 to vector<2x10xf32>
    %145 = arith.mulf %144, %143 : vector<2x10xf32>
    %146 = vector.broadcast %141 : vector<2x1xf32> to vector<2x10xf32>
    %147 = arith.subf %146, %145 : vector<2x10xf32>
    %c0_82 = arith.constant 0 : index
    %c0_83 = arith.constant 0 : index
    %148 = vector.load %arg11[%c0_82, %c0_83] : memref<1x10xf32, #tpu.memory_space<vmem>>, vector<1x10xf32>
    %149 = vector.broadcast %148 : vector<1x10xf32> to vector<2x10xf32>
    %150 = arith.addf %147, %149 : vector<2x10xf32>
    %c0_84 = arith.constant 0 : index
    %c0_85 = arith.constant 0 : index
    %151 = vector.load %arg12[%c0_84, %c0_85] : memref<2x10xf32, #tpu.memory_space<vmem>>, vector<2x10xf32>
    tpu.vector_store %arg12[%c0_84, %c0_85], %150 {strides = array<i32>} : memref<2x10xf32, #tpu.memory_space<vmem>>, vector<2x10xf32>,
    return
  }
  func.func @transform_0(%arg0: i32) -> (i32, i32, i32) {
    %c0_i32 = arith.constant 0 : i32
    %c0_i32_0 = arith.constant 0 : i32
    %c0_i32_1 = arith.constant 0 : i32
    return %arg0, %c0_i32, %c0_i32_0 : i32, i32, i32
  }
  func.func @transform_1(%arg0: i32) -> (i32, i32, i32) {
    %c0_i32 = arith.constant 0 : i32
    %c0_i32_0 = arith.constant 0 : i32
    %c0_i32_1 = arith.constant 0 : i32
    %c0_i32_2 = arith.constant 0 : i32
    return %c0_i32, %c0_i32_0, %c0_i32_1 : i32, i32, i32
  }
  func.func @transform_2(%arg0: i32) -> (i32, i32) {
    %c0_i32 = arith.constant 0 : i32
    %c0_i32_0 = arith.constant 0 : i32
    %c0_i32_1 = arith.constant 0 : i32
    return %c0_i32, %c0_i32_0 : i32, i32
  }
  func.func @transform_3(%arg0: i32) -> (i32, i32, i32) {
    %c0_i32 = arith.constant 0 : i32
    %c0_i32_0 = arith.constant 0 : i32
    %c0_i32_1 = arith.constant 0 : i32
    %c0_i32_2 = arith.constant 0 : i32
    return %c0_i32, %c0_i32_0, %c0_i32_1 : i32, i32, i32
  }
  func.func @transform_4(%arg0: i32) -> (i32, i32) {
    %c0_i32 = arith.constant 0 : i32
    %c0_i32_0 = arith.constant 0 : i32
    %c0_i32_1 = arith.constant 0 : i32
    return %c0_i32, %c0_i32_0 : i32, i32
  }
  func.func @transform_5(%arg0: i32) -> (i32, i32, i32) {
    %c0_i32 = arith.constant 0 : i32
    %c0_i32_0 = arith.constant 0 : i32
    %c0_i32_1 = arith.constant 0 : i32
    %c0_i32_2 = arith.constant 0 : i32
    return %c0_i32, %c0_i32_0, %c0_i32_1 : i32, i32, i32
  }
  func.func @transform_6(%arg0: i32) -> (i32, i32) {
    %c0_i32 = arith.constant 0 : i32
    %c0_i32_0 = arith.constant 0 : i32
    %c0_i32_1 = arith.constant 0 : i32
    return %c0_i32, %c0_i32_0 : i32, i32
  }
  func.func @transform_7(%arg0: i32) -> (i32, i32) {
    %c0_i32 = arith.constant 0 : i32
    %c0_i32_0 = arith.constant 0 : i32
    %c0_i32_1 = arith.constant 0 : i32
    return %c0_i32, %c0_i32_0 : i32, i32
  }
  func.func @transform_8(%arg0: i32) -> (i32, i32) {
    %c0_i32 = arith.constant 0 : i32
    %c0_i32_0 = arith.constant 0 : i32
    %c0_i32_1 = arith.constant 0 : i32
    return %c0_i32, %c0_i32_0 : i32, i32
  }
  func.func @transform_9(%arg0: i32) -> (i32, i32) {
    %c0_i32 = arith.constant 0 : i32
    %c0_i32_0 = arith.constant 0 : i32
    %c0_i32_1 = arith.constant 0 : i32
    return %c0_i32, %c0_i32_0 : i32, i32
  }
  func.func @transform_10(%arg0: i32) -> (i32, i32) {
    %c0_i32 = arith.constant 0 : i32
    %c0_i32_0 = arith.constant 0 : i32
    %c0_i32_1 = arith.constant 0 : i32
    return %c0_i32, %c0_i32_0 : i32, i32
  }
  func.func @transform_11(%arg0: i32) -> (i32, i32) {
    %c0_i32 = arith.constant 0 : i32
    %c0_i32_0 = arith.constant 0 : i32
    return %arg0, %c0_i32 : i32, i32
  }
}

</mosaic_0001>

<bundles_post_ra>
// kernel: tile.13
= control target key start
LH: loop header
LB: loop body
LE: loop exit
PB: predicated region body
PF: predicated region fallthrough
CT: control target
= control target key end

     0   :  { %s28_s0 = inlined_call_operand.vmem [shape: f32[6], index: 0, kind: input, shape index: {}]   ;;  %s29_s1 = inlined_call_operand.vmem [shape: f32[14,6], index: 1, kind: output, shape index: {}]  }
   0x1   :  { %v4_v0 = vld [vmem:[%s28_s0] ss:$0 sm:$0xff] }
   0x2   :  { %5 = vst [vmem:[%s29_s1] sm:$0xff] %v4_v0  ;;  %8 = vst [vmem:[%s29_s1 + $0x8] sm:$0xff] %v4_v0 }

// kernel: tile.14
= control target key start
LH: loop header
LB: loop body
LE: loop exit
PB: predicated region body
PF: predicated region fallthrough
CT: control target
= control target key end

     0   :  { %s115_s10 = smov 78   ;;  %s116_s11 = smov 66   ;;  %vm3_vm0 = vcmask 48128   ;;  %vm9_vm1 = vcmask 687728   ;;  %vm15_vm2 = vcmask 638528   ;;  %vm21_vm3 = vcmask 589328   ;;  %s183_s0 = inlined_call_operand.vmem [shape: f32[14,6], index: 0, kind: input, shape index: {}]   ;;  %s184_s1 = inlined_call_operand.vmem [shape: f32[1,84], index: 1, kind: output, shape index: {}]  }
   0x1   :  { %v89_v0 = vld [vmem:[%s183_s0 + $0xd] sm:$0x1]   ;;  %v91_v1 = vld [vmem:[%s183_s0 + $0xb] sm:$0x1]   ;;  %v90_v2 = vld [vmem:[%s183_s0 + $0xc] sm:$0x1]  }
   0x2   :  { %7 = vrot.lane.b32.xlu0 %v89_v0, %s115_s10  ;;  %19 = vrot.lane.b32.xlu1 %v91_v1, %s116_s11  ;;  %v92_v3 = vld [vmem:[%s183_s0 + $0xa] sm:$0x1]   ;;  %s117_s16 = smov 72   ;;  %s118_s17 = smov 60   ;;  %v93_v4 = vld [vmem:[%s183_s0 + $0x9] sm:$0x1]  }
   0x3   :  { %v94_v5 = vld [vmem:[%s183_s0 + $0x8] sm:$0x1]   ;;  %v2_v6 = vld [vmem:[%s183_s0] sm:$0x1]   ;;  %s119_s24 = smov 54   ;;  %s120_s25 = smov 48  }
   0x4   :  { %4 = vst.msk [vmem:[#allocation0] sm:$0x1] %vm3_vm0, %v2_v6   ;;  %v95_v7 = vld [vmem:[%s183_s0 + $0x7] sm:$0x1]   ;;  %v96_v8 = vld [vmem:[%s183_s0 + $0x6] sm:$0x1]  }
   0x5   :  { %s121_s30 = smov 42   ;;  %s122_s2 = smov 36   ;;  %v97_v9 = vld [vmem:[%s183_s0 + $0x5] sm:$0x1]   ;;  %v98_v10 = vld [vmem:[%s183_s0 + $0x4] sm:$0x1]  }
   0x6   :  { %13 = vrot.lane.b32.xlu0 %v90_v2, %s117_s16  ;;  %25 = vrot.lane.b32.xlu1 %v92_v3, %s118_s17  ;;  %s123_s7 = smov 30   ;;  %s124_s8 = smov 24   ;;  %v99_v11 = vld [vmem:[%s183_s0 + $0x3] sm:$0x1]   ;;  %v100_v12 = vld [vmem:[%s183_s0 + $0x2] sm:$0x1]  }
   0x7   :  { %s125_s13 = smov 18   ;;  %s126_s14 = smov 12   ;;  %v101_v13 = vld [vmem:[%s183_s0 + $0x1] sm:$0x1]   ;;  %vm27_vm4 = vcmask 540128   ;;  %vm33_vm5 = vcmask 490928  }
   0x8   :  { %s127_s0 = smov 6   ;;  %vm39_vm6 = vcmask 441728   ;;  %vm45_vm7 = vcmask 392528   ;;  %vm51_vm8 = vcmask 343328   ;;  %vm57_vm9 = vcmask 294128  }
   0x9   :  { %vm63_vm10 = vcmask 244928   ;;  %vm69_vm11 = vcmask 195728   ;;  %vm75_vm12 = vcmask 146528   ;;  %vm81_vm13 = vcmask 97328  }
   0xa   :  { %31 = vrot.lane.b32.xlu0 %v93_v4, %s119_s24  ;;  %37 = vrot.lane.b32.xlu1 %v94_v5, %s120_s25 }
   0xe   :  { %43 = vrot.lane.b32.xlu0 %v95_v7, %s121_s30  ;;  %49 = vrot.lane.b32.xlu1 %v96_v8, %s122_s2 }
  0x12   :  { %55 = vrot.lane.b32.xlu0 %v97_v9, %s123_s7  ;;  %61 = vrot.lane.b32.xlu1 %v98_v10, %s124_s8 }
  0x16   :  { %67 = vrot.lane.b32.xlu0 %v99_v11, %s125_s13  ;;  %73 = vrot.lane.b32.xlu1 %v100_v12, %s126_s14 }
  0x1a   :  { %79 = vrot.lane.b32.xlu0 %v101_v13, %s127_s0 }
  0x74   :  { %v8_v14 = vpop.permute.xlu0 %7   ;;  %v20_v15 = vpop.permute.xlu1 %19  }
  0x75   :  { %10 = vst.msk [vmem:[#allocation0] sm:$0x1] %vm9_vm1, %v8_v14  }
  0x78   :  { %v14_v16 = vpop.permute.xlu0 %13   ;;  %v26_v17 = vpop.permute.xlu1 %25  }
  0x79   :  { %16 = vst.msk [vmem:[#allocation0] sm:$0x1] %vm15_vm2, %v14_v16  }
  0x7a   :  { %22 = vst.msk [vmem:[#allocation0] sm:$0x1] %vm21_vm3, %v20_v15  }
  0x7b   :  { %28 = vst.msk [vmem:[#allocation0] sm:$0x1] %vm27_vm4, %v26_v17  }
  0x7c   :  { %v32_v18 = vpop.permute.xlu0 %31   ;;  %v38_v19 = vpop.permute.xlu1 %37  }
  0x7d   :  { %34 = vst.msk [vmem:[#allocation0] sm:$0x1] %vm33_vm5, %v32_v18  }
  0x7e   :  { %40 = vst.msk [vmem:[#allocation0] sm:$0x1] %vm39_vm6, %v38_v19  }
  0x80   :  { %v44_v20 = vpop.permute.xlu0 %43   ;;  %v50_v21 = vpop.permute.xlu1 %49  }
  0x81   :  { %46 = vst.msk [vmem:[#allocation0] sm:$0x1] %vm45_vm7, %v44_v20  }
  0x82   :  { %52 = vst.msk [vmem:[#allocation0] sm:$0x1] %vm51_vm8, %v50_v21  }
  0x84   :  { %v56_v22 = vpop.permute.xlu0 %55   ;;  %v62_v23 = vpop.permute.xlu1 %61  }
  0x85   :  { %58 = vst.msk [vmem:[#allocation0] sm:$0x1] %vm57_vm9, %v56_v22  }
  0x86   :  { %64 = vst.msk [vmem:[#allocation0] sm:$0x1] %vm63_vm10, %v62_v23  }
  0x88   :  { %v68_v24 = vpop.permute.xlu0 %67   ;;  %v74_v25 = vpop.permute.xlu1 %73  }
  0x89   :  { %70 = vst.msk [vmem:[#allocation0] sm:$0x1] %vm69_vm11, %v68_v24  }
  0x8a   :  { %76 = vst.msk [vmem:[#allocation0] sm:$0x1] %vm75_vm12, %v74_v25  }
  0x8c   :  { %v80_v26 = vpop.permute.xlu0 %79  }
  0x8d   :  { %82 = vst.msk [vmem:[#allocation0] sm:$0x1] %vm81_vm13, %v80_v26  }
  0x94   :  { %v86_v27 = vld [vmem:[#allocation0] sm:$0x1] }
  0x95   :  { %88 = vst [vmem:[%s184_s1] sm:$0x1] %v86_v27 }

// kernel: tile.18
= control target key start
LH: loop header
LB: loop body
LE: loop exit
PB: predicated region body
PF: predicated region fallthrough
CT: control target
= control target key end

     0   :  { %s22_s0 = inlined_call_operand.vmem [shape: f32[16], index: 0, kind: input, shape index: {}]   ;;  %s23_s1 = inlined_call_operand.vmem [shape: f32[5,16], index: 1, kind: output, shape index: {}]  }
   0x1   :  { %v4_v0 = vld [vmem:[%s22_s0] ss:$0 sm:$0xff] }
   0x2   :  { %5 = vst [vmem:[%s23_s1] sm:$0xff] %v4_v0 }

// kernel: tile.19
= control target key start
LH: loop header
LB: loop body
LE: loop exit
PB: predicated region body
PF: predicated region fallthrough
CT: control target
= control target key end

     0   :  { %s43_s10 = smov 64   ;;  %s44_s11 = smov 32   ;;  %vm3_vm0 = vcmask 130048   ;;  %vm9_vm1 = vcmask 654848   ;;  %vm15_vm2 = vcmask 523648   ;;  %vm21_vm3 = vcmask 392448   ;;  %s75_s0 = inlined_call_operand.vmem [shape: f32[5,16], index: 0, kind: input, shape index: {}]   ;;  %s76_s1 = inlined_call_operand.vmem [shape: f32[1,80], index: 1, kind: output, shape index: {}]  }
   0x1   :  { %v35_v0 = vld [vmem:[%s75_s0 + $0x4] sm:$0x1]   ;;  %v37_v1 = vld [vmem:[%s75_s0 + $0x2] sm:$0x1]   ;;  %v36_v2 = vld [vmem:[%s75_s0 + $0x3] sm:$0x1]  }
   0x2   :  { %7 = vrot.lane.b32.xlu0 %v35_v0, %s43_s10  ;;  %19 = vrot.lane.b32.xlu1 %v37_v1, %s44_s11  ;;  %v38_v3 = vld [vmem:[%s75_s0 + $0x1] sm:$0x1]   ;;  %v2_v4 = vld [vmem:[%s75_s0] sm:$0x1]   ;;  %s45_s0 = smov 48   ;;  %s46_s18 = smov 16  }
   0x3   :  { %4 = vst.msk [vmem:[#allocation0] sm:$0x1] %vm3_vm0, %v2_v4   ;;  %vm27_vm4 = vcmask 261248  }
   0x6   :  { %13 = vrot.lane.b32.xlu0 %v36_v2, %s45_s0  ;;  %25 = vrot.lane.b32.xlu1 %v38_v3, %s46_s18 }
  0x74   :  { %v8_v5 = vpop.permute.xlu0 %7   ;;  %v20_v6 = vpop.permute.xlu1 %19  }
  0x75   :  { %10 = vst.msk [vmem:[#allocation0] sm:$0x1] %vm9_vm1, %v8_v5  }
  0x78   :  { %v14_v7 = vpop.permute.xlu0 %13   ;;  %v26_v8 = vpop.permute.xlu1 %25  }
  0x79   :  { %16 = vst.msk [vmem:[#allocation0] sm:$0x1] %vm15_vm2, %v14_v7  }
  0x7a   :  { %22 = vst.msk [vmem:[#allocation0] sm:$0x1] %vm21_vm3, %v20_v6  }
  0x7b   :  { %28 = vst.msk [vmem:[#allocation0] sm:$0x1] %vm27_vm4, %v26_v8  }
  0x82   :  { %v32_v9 = vld [vmem:[#allocation0] sm:$0x1] }
  0x83   :  { %34 = vst [vmem:[%s76_s1] sm:$0x1] %v32_v9 }

// kernel: lenet5_forward.1
= control target key start
LH: loop header
LB: loop body
LE: loop exit
PB: predicated region body
PF: predicated region fallthrough
CT: control target
= control target key end

     0   :  { %v4341_v3 = vmov 0.0|0.0   ;;  %vm4342_vm0 = vmmov 0   ;;  %v4343_v6 = vmov 0.0   ;;  %vm67_vm1 = vcmask 1042432   ;;  %s5929_s0 = inlined_call_operand.vmem [shape: f32[2,32,32], index: 0, kind: input, shape index: {}]   ;;  %s5930_s1 = inlined_call_operand.vmem [shape: f32[5,32,84], index: 1, kind: input, shape index: {}]   ;;  %s5931_s2 = inlined_call_operand.vmem [shape: f32[1,84], index: 2, kind: input, shape index: {}]   ;;  %s5932_s3 = inlined_call_operand.vmem [shape: f32[5,84,80], index: 3, kind: input, shape index: {}]   ;;  %s5933_s4 = inlined_call_operand.vmem [shape: f32[1,80], index: 4, kind: input, shape index: {}]   ;;  %s5934_s5 = inlined_call_operand.vmem [shape: f32[5,80,120], index: 5, kind: input, shape index: {}]   ;;  %s5935_s6 = inlined_call_operand.vmem [shape: f32[1,120], index: 6, kind: input, shape index: {}]   ;;  %s5936_s7 = inlined_call_operand.vmem [shape: f32[120,84], index: 7, kind: input, shape index: {}]   ;;  %s5937_s8 = inlined_call_operand.vmem [shape: f32[1,84], index: 8, kind: input, shape index: {}]   ;;  %s5938_s9 = inlined_call_operand.vmem [shape: f32[84,10], index: 9, kind: input, shape index: {}]   ;;  %s5939_s10 = inlined_call_operand.vmem [shape: f32[1,10], index: 10, kind: input, shape index: {}]   ;;  %s5940_s11 = inlined_call_operand.hbm [shape: f32[2,10], index: 11, kind: output, shape index: {}]  }
   0x1   :  { %v2960_v0 = vld [vmem:[%s5930_s1 + $0x20] sm:$0xff]  ;;  %v2961_v1 = vld [vmem:[%s5930_s1 + $0x28] sm:$0xff]  ;;  %v2962_v2 = vld [vmem:[%s5930_s1 + $0x30] sm:$0xff]  ;;  %3852 = vmatprep.subr.bf16.mxu0 %v4341_v3  ;;  %3387 = vmatprep.mubr.msk.f32.mxu0 %vm4342_vm0, %v4343_v6  ;;  %vm68_vm2 = vcmask 1046532   ;;  %vm126_vm4 = vcmask 261120  }
   0x2   :  { %v3853_v4 = vpack.c.bf16 %v2961_v1, %v2960_v0  ;;  %v2963_v5 = vld [vmem:[%s5930_s1 + $0x38] sm:$0xff]  ;;  %v4424_v7 = vld [vmem:[%s5929_s0] sm:$0xff]  ;;  %v4429_v8 = vld [vmem:[%s5929_s0 + $0x8] sm:$0xff]  ;;  %3882 = vmatprep.subr.bf16.mxu1 %v4341_v3  ;;  %3546 = vmatprep.mubr.msk.f32.mxu1 %vm4342_vm0, %v4343_v6 }
   0x3   :  { %v4433_v9 = vcombine.high %v4424_v7, %v4424_v7  ;;  %v2958_v10 = vrot.slane %v4424_v7, 9  ;;  %v75_v11 = vrot.slane %v4429_v8, 5  ;;  %v3856_v12 = vpack.c.bf16 %v2963_v5, %v2962_v2  ;;  %vm4440_vm3 = vmor %vm67_vm1, %vm68_vm2  ;;  %v4447_v14 = vld [vmem:[%s5929_s0 + $0x10] sm:$0xff]  ;;  %v61_v17 = vld [vmem:[%s5930_s1] sm:$0xff] }
   0x4   :  { %3854 = vmatpush3.bf16.msra.mxu0 %v3853_v4  ;;  %v4451_v15 = vcombine.high %v4429_v8, %v4429_v8  ;;  %v62_v18 = vld [vmem:[%s5930_s1 + $0x8] sm:$0xff]  ;;  %v4463_v20 = vcombine.high %v4447_v14, %v4447_v14  ;;  %v4468_v21 = vld [vmem:[%s5929_s0 + $0x20] sm:$0xff]  ;;  %v81_v23 = vrot.slane %v4447_v14, 5  ;;  %v4475_v24 = vld [vmem:[%s5929_s0 + $0x18] sm:$0xff] }
   0x5   :  { %3855 = vmatprep.subr.bf16.mxu0 %v4341_v3  ;;  %v72_v16 = vrot.slane %v4433_v9, 5  ;;  %v77_v19 = vrot.slane %v75_v11, 4  ;;  %v4482_v28 = vcombine.high %v4475_v24, %v4475_v24  ;;  %v3859_v29 = vpack.c.bf16 %v62_v18, %v61_v17  ;;  %v63_v39 = vld [vmem:[%s5930_s1 + $0x10] sm:$0xff]  ;;  %v64_v40 = vld [vmem:[%s5930_s1 + $0x18] sm:$0xff]  ;;  %v4505_v41 = vld [vmem:[%s5929_s0 + $0x28] sm:$0xff] }
   0x6   :  { %v78_v22 = vrot.slane %v4451_v15, 5  ;;  %v84_v27 = vrot.slane %v4463_v20, 5  ;;  %v83_v31 = vrot.slane %v81_v23, 4  ;;  %v4486_v32 = vcombine.high %v4468_v21, %v4468_v21 }
   0x7   :  { %v73_v25 = vsel %vm4440_vm3, %v2958_v10, %v72_v16  ;;  %v74_v26 = vrot.slane %v72_v16, 4  ;;  %v87_v36 = vrot.slane %v4475_v24, 5  ;;  %v90_v43 = vrot.slane %v4482_v28, 5 }
   0x8   :  { %3857 = vmatpush3.bf16.msra.mxu0 %v3856_v12  ;;  %v80_v30 = vrot.slane %v78_v22, 4  ;;  %v79_v34 = vsel %vm4440_vm3, %v77_v19, %v78_v22  ;;  %v86_v35 = vrot.slane %v84_v27, 4 }
   0x9   :  { %v76_v33 = vsel %vm4440_vm3, %v74_v26, %v75_v11  ;;  %3858 = vmatprep.subr.bf16.mxu0 %v4341_v3  ;;  %v89_v42 = vrot.slane %v87_v36, 4 }
   0xa   :  { %v119_v37 = vcombine.low %v73_v25, %v76_v33  ;;  %v82_v38 = vsel %vm4440_vm3, %v80_v30, %v81_v23 }
   0xb   :  { %16 = vsyncpa [#allocation3], 0  ;;  %v120_v44 = vcombine.low %v79_v34, %v82_v38  ;;  %v85_v45 = vsel %vm4440_vm3, %v83_v31, %v84_v27  ;;  %v2959_v46 = vrot.slane %v4468_v21, 9  ;;  %v94_v47 = vrot.slane %v4486_v32, 5  ;;  %v4526_v52 = vld [vmem:[%s5929_s0 + $0x30] sm:$0xff]  ;;  %v4544_v61 = vld [vmem:[%s5929_s0 + $0x38] sm:$0xff] }
   0xc   :  { %3388 = vmatmul.mubr.msk.f32.vlgmr.msra.gmra.mrb[0].mxu0 %vm126_vm4, %v119_v37  ;;  %v88_v48 = vsel %vm4440_vm3, %v86_v35, %v87_v36  ;;  %v3862_v49 = vpack.c.bf16 %v64_v40, %v63_v39  ;;  %v4519_v50 = vcombine.high %v4505_v41, %v4505_v41  ;;  %v97_v51 = vrot.slane %v4505_v41, 5  ;;  %v2980_v26 = vld [vmem:[%s5930_s1 + $0x40] sm:$0xff]  ;;  %v2981_v27 = vld [vmem:[%s5930_s1 + $0x48] sm:$0xff] }
   0xd   :  { %3860 = vmatpush3.bf16.msra.mxu0 %v3859_v29  ;;  %3390 = vmatprep.mubr.msk.f32.mxu0 %vm4342_vm0, %v4343_v6  ;;  %v121_v53 = vcombine.low %v85_v45, %v88_v48  ;;  %v91_v54 = vsel %vm4440_vm3, %v89_v42, %v90_v43  ;;  %v95_v55 = vsel %vm4440_vm3, %v2959_v46, %v94_v47  ;;  %v96_v56 = vrot.slane %v94_v47, 4  ;;  %v2982_v43 = vld [vmem:[%s5930_s1 + $0x50] sm:$0xff] }
   0xe   :  { %3861 = vmatprep.subr.bf16.mxu0 %v4341_v3  ;;  %v99_v57 = vrot.slane %v97_v51, 4  ;;  %v100_v58 = vrot.slane %v4519_v50, 5  ;;  %v4538_v59 = vcombine.high %v4526_v52, %v4526_v52  ;;  %v103_v60 = vrot.slane %v4526_v52, 5 }
   0xf   :  { %v122_v62 = vcombine.low %v91_v54, %v95_v55  ;;  %v98_v63 = vsel %vm4440_vm3, %v96_v56, %v97_v51  ;;  %v4552_v0 = vcombine.high %v4544_v61, %v4544_v61  ;;  %v109_v1 = vrot.slane %v4544_v61, 5 }
  0x10   :  { %3391 = vmatmul.mubr.msk.f32.gmra.mrb[2].mxu0 %vm126_vm4, %v120_v44  ;;  %v101_v2 = vsel %vm4440_vm3, %v99_v57, %v100_v58  ;;  %v102_v4 = vrot.slane %v100_v58, 4  ;;  %v105_v5 = vrot.slane %v103_v60, 4  ;;  %v106_v10 = vrot.slane %v4538_v59, 5  ;;  %v2983_v44 = vld [vmem:[%s5930_s1 + $0x58] sm:$0xff] }
  0x11   :  { %3393 = vmatprep.mubr.msk.f32.mxu0 %vm4342_vm0, %v4343_v6  ;;  %3863 = vmatpush3.bf16.msra.mxu0 %v3862_v49  ;;  %v123_v11 = vcombine.low %v98_v63, %v101_v2  ;;  %v111_v12 = vrot.slane %v109_v1, 4  ;;  %v112_v19 = vrot.slane %v4552_v0, 5  ;;  %vm542_vm5 = vcmask 1040384  }
  0x12   :  { %3864 = vmatprep.subr.bf16.mxu0 %v4341_v3  ;;  %v104_v16 = vsel %vm4440_vm3, %v102_v4, %v103_v60  ;;  %v107_v17 = vsel %vm4440_vm3, %v105_v5, %v106_v10  ;;  %v108_v18 = vrot.slane %v106_v10, 4  ;;  %vm543_vm6 = vcmask 1044484  }
  0x13   :  { %v124_v22 = vcombine.low %v104_v16, %v107_v17  ;;  %v113_v25 = vsel %vm4440_vm3, %v111_v12, %v112_v19  ;;  %vm4583_vm7 = vmor %vm542_vm5, %vm543_vm6  ;;  %v2991_v13 = vrot.slane %v4424_v7, 11  ;;  %v547_v31 = vrot.slane %v4433_v9, 7 }
  0x14   :  { %3394 = vmatmul.mubr.msk.f32.gmra.mrb[4].mxu0 %vm126_vm4, %v121_v53  ;;  %v110_v23 = vsel %vm4440_vm3, %v108_v18, %v109_v1  ;;  %v241_v33 = vcombine.low %v4424_v7, %v4433_v9  ;;  %v3865_v34 = vpack.c.bf16 %v2981_v27, %v2980_v26  ;;  %v242_v35 = vcombine.low %v4429_v8, %v4451_v15 }
  0x15   :  { %3396 = vmatprep.mubr.msk.f32.mxu0 %vm4342_vm0, %v4343_v6  ;;  %v125_v29 = vcombine.low %v110_v23, %v113_v25  ;;  %v4597_v36 = vsel %vm4583_vm7, %v2991_v13, %v547_v31  ;;  %v549_v37 = vrot.slane %v547_v31, 4  ;;  %v243_v38 = vcombine.low %v4447_v14, %v4463_v20 }
  0x16   :  { %v550_v39 = vrot.slane %v4429_v8, 7  ;;  %v553_v40 = vrot.slane %v4451_v15, 7  ;;  %v556_v42 = vrot.slane %v4447_v14, 7  ;;  %v559_v45 = vrot.slane %v4463_v20, 7 }
  0x17   :  { %v562_v46 = vrot.slane %v4475_v24, 7  ;;  %v565_v47 = vrot.slane %v4482_v28, 7  ;;  %v2992_v48 = vrot.slane %v4468_v21, 11  ;;  %v569_v58 = vrot.slane %v4486_v32, 7 }
  0x18   :  { %3397 = vmatmul.mubr.msk.f32.gmra.mrb[6].mxu0 %vm126_vm4, %v122_v62  ;;  %v4619_v49 = vsel %vm4583_vm7, %v549_v37, %v550_v39  ;;  %v552_v51 = vrot.slane %v550_v39, 4  ;;  %v555_v53 = vrot.slane %v553_v40, 4  ;;  %v558_v54 = vrot.slane %v556_v42, 4 }
  0x19   :  { %3399 = vmatprep.mubr.msk.f32.mxu0 %vm4342_vm0, %v4343_v6  ;;  %v594_v55 = vcombine.low %v4597_v36, %v4619_v49  ;;  %v561_v56 = vrot.slane %v559_v45, 4  ;;  %v564_v57 = vrot.slane %v562_v46, 4  ;;  %v3868_v60 = vpack.c.bf16 %v2983_v44, %v2982_v43  ;;  %v3054_v36 = vld [vmem:[%s5932_s3 + $0xa0] sm:$0xff] }
  0x1a   :  { %v4626_v62 = vsel %vm4583_vm7, %v552_v51, %v553_v40  ;;  %v4630_v63 = vsel %vm4583_vm7, %v555_v53, %v556_v42  ;;  %v4634_v1 = vsel %vm4583_vm7, %v558_v54, %v559_v45  ;;  %v4649_v10 = vsel %vm4583_vm7, %v2992_v48, %v569_v58 }
  0x1b   :  { %v595_v2 = vcombine.low %v4626_v62, %v4630_v63  ;;  %v4641_v4 = vsel %vm4583_vm7, %v561_v56, %v562_v46  ;;  %v4645_v5 = vsel %vm4583_vm7, %v564_v57, %v565_v47  ;;  %v571_v16 = vrot.slane %v569_v58, 4 }
  0x1c   :  { %3400 = vmatmul.mubr.msk.f32.gmra.mrb[8].mxu0 %vm126_vm4, %v123_v11  ;;  %v596_v11 = vcombine.low %v4634_v1, %v4641_v4  ;;  %v597_v12 = vcombine.low %v4645_v5, %v4649_v10  ;;  %v572_v17 = vrot.slane %v4505_v41, 7  ;;  %v575_v18 = vrot.slane %v4519_v50, 7  ;;  %v3044_v5 = vld [vmem:[%s5931_s2] ss:$0 sm:$0xff] }
  0x1d   :  { %3402 = vmatprep.mubr.msk.f32.mxu0 %vm4342_vm0, %v4343_v6  ;;  %v578_v19 = vrot.slane %v4526_v52, 7  ;;  %v584_v23 = vrot.slane %v4544_v61, 7  ;;  %v587_v27 = vrot.slane %v4552_v0, 7  ;;  %v728_v39 = vcombine.low %v4451_v15, %v4447_v14 }
  0x1e   :  { %v4665_v25 = vsel %vm4583_vm7, %v571_v16, %v572_v17  ;;  %v574_v26 = vrot.slane %v572_v17, 4  ;;  %v577_v13 = vrot.slane %v575_v18, 4  ;;  %v729_v40 = vcombine.low %v4463_v20, %v4475_v24 }
  0x1f   :  { %v580_v31 = vrot.slane %v578_v19, 4  ;;  %v3008_v47 = vcombine.high %v4475_v24, %v4468_v21  ;;  %v731_v48 = vcombine.low %v4505_v41, %v4519_v50  ;;  %v244_v51 = vcombine.low %v4475_v24, %v4468_v21 }
  0x20   :  { %3403 = vmatmul.mubr.msk.f32.gmra.mrb[10].mxu0 %vm126_vm4, %v124_v22  ;;  %v581_v22 = vrot.slane %v4538_v59, 7  ;;  %v4675_v37 = vsel %vm4583_vm7, %v574_v26, %v575_v18  ;;  %v4686_v42 = vsel %vm4583_vm7, %v577_v13, %v578_v19  ;;  %v732_v30 = vcombine.low %v4526_v52, %v4538_v59  ;;  %v2994_v13 = vld [vmem:[%s5930_s1 + $0x68] sm:$0xff] }
  0x21   :  { %3405 = vmatprep.mubr.msk.f32.mxu0 %vm4342_vm0, %v4343_v6  ;;  %v733_v54 = vcombine.low %v4544_v61, %v4552_v0  ;;  %v367_v56 = vrot.slane %v4433_v9, 6  ;;  %vm362_vm8 = vcmask 1041408   ;;  %vm363_vm9 = vcmask 1045508  }
  0x22   :  { %v4690_v43 = vsel %vm4583_vm7, %v580_v31, %v581_v22  ;;  %v246_v57 = vcombine.low %v4519_v50, %v4526_v52  ;;  %v2978_v58 = vrot.slane %v4424_v7, 10  ;;  %v370_v16 = vrot.slane %v4429_v8, 6  ;;  %vm4734_vm10 = vmor %vm362_vm8, %vm363_vm9 }
  0x23   :  { %v599_v45 = vcombine.low %v4686_v42, %v4690_v43  ;;  %v373_v17 = vrot.slane %v4451_v15, 6  ;;  %v247_v19 = vcombine.low %v4538_v59, %v4544_v61  ;;  %v3047_v15 = vld [vmem:[%s5932_s3 + $0x68] sm:$0xff]  ;;  %vm1477_vm11 = vcmask 1043456   ;;  %v4982_v43 = vld [vmem:[%s5932_s3] sm:$0xff] }
  0x24   :  { %3406 = vmatmul.mubr.msk.f32.gmra.mrb[12].mxu0 %vm126_vm4, %v125_v29  ;;  %v727_v29 = vcombine.low %v4433_v9, %v4429_v8  ;;  %v368_v7 = vsel %vm4734_vm10, %v2978_v58, %v367_v56  ;;  %v372_v31 = vrot.slane %v370_v16, 4  ;;  %v3045_v8 = vld [vmem:[%s5932_s3 + $0x58] sm:$0xff]  ;;  %v3046_v9 = vld [vmem:[%s5932_s3 + $0x60] sm:$0xff]  ;;  %v4344_v62 = vmov 1983009808  }
  0x25   :  { %3416 = vmatprep.mubr.msk.f32.mxu0 %vm4342_vm0, %v4343_v6  ;;  %v864_v63 = vunpack.c.l.s4 %v4344_v62  ;;  %v866_v1 = vlaneseq  ;;  %v1127_v10 = vcombine.high %v3044_v5, %v3044_v5  ;;  %vm1447_vm12 = vcmask 1041409  }
  0x26   :  { %vm1449_vm13 = vcmask 1042434   ;;  %vm1451_vm14 = vcmask 1043459   ;;  %vm1454_vm15 = vcmask 1045509   ;;  %vm1456_vm1 = vcmask 1046534  }
  0x27   :  { %v867_v4 = vshrl.u32 %v866_v1, 7  ;;  %vm1458_vm2 = vcmask 1047559   ;;  %vm1470_vm3 = vcmask 687104   ;;  %vm2841_vm5 = vcmask 680960  }
  0x28   :  { %3417 = vmatmul.mubr.msk.f32.vlgmr.msra.gmra.mrb[0].mxu0 %vm126_vm4, %v241_v33  ;;  %v583_v33 = vrot.slane %v581_v22, 4  ;;  %v376_v22 = vrot.slane %v4447_v14, 6  ;;  %v3883_v14 = vpack.c.bf16 %v3046_v9, %v3045_v8 }
  0x29   :  { %3866 = vmatpush3.bf16.msra.mxu0 %v3865_v34  ;;  %3419 = vmatprep.mubr.msk.f32.mxu0 %vm4342_vm0, %v4343_v6  ;;  %v586_v34 = vrot.slane %v584_v23, 4 }
  0x2a   :  { %3867 = vmatprep.subr.bf16.mxu0 %v4341_v3  ;;  %v4694_v44 = vsel %vm4583_vm7, %v583_v33, %v584_v23  ;;  %v379_v23 = vrot.slane %v4463_v20, 6  ;;  %v375_v33 = vrot.slane %v373_v17, 4  ;;  %v378_v58 = vrot.slane %v376_v22, 4  ;;  %3884 = vmatpush3.bf16.msra.mxu1 %v3883_v14  ;;  %v3048_v20 = vld [vmem:[%s5932_s3 + $0x70] sm:$0xff] }
  0x2b   :  { %v4700_v46 = vsel %vm4583_vm7, %v586_v34, %v587_v27  ;;  %v2993_v27 = vld [vmem:[%s5930_s1 + $0x60] sm:$0xff]  ;;  %3885 = vmatprep.subr.bf16.mxu1 %v4341_v3 }
  0x2c   :  { %3420 = vmatmul.mubr.msk.f32.gmra.mrb[2].mxu0 %vm126_vm4, %v242_v35  ;;  %v598_v35 = vcombine.low %v4665_v25, %v4675_v37  ;;  %v600_v53 = vcombine.low %v4694_v44, %v4700_v46  ;;  %v4987_v44 = vld [vmem:[%s5932_s3 + $0x8] sm:$0xff]  ;;  %v4995_v46 = vld [vmem:[%s5932_s3 + $0x10] sm:$0xff] }
  0x2d   :  { %3422 = vmatprep.mubr.msk.f32.mxu0 %vm4342_vm0, %v4343_v6  ;;  %3869 = vmatpush3.bf16.msra.mxu0 %v3868_v60  ;;  %v369_v60 = vrot.slane %v367_v56, 4  ;;  %v374_v56 = vsel %vm4734_vm10, %v372_v31, %v373_v17  ;;  %v2979_v17 = vrot.slane %v4468_v21, 10  ;;  %v3886_v21 = vpack.c.bf16 %v3048_v20, %v3047_v15 }
  0x2e   :  { %3870 = vmatprep.subr.bf16.mxu0 %v4341_v3 }
  0x2f   :  { %v371_v26 = vsel %vm4734_vm10, %v369_v60, %v370_v16  ;;  %v381_v60 = vrot.slane %v379_v23, 4  ;;  %v2995_v16 = vld [vmem:[%s5930_s1 + $0x70] sm:$0xff]  ;;  %3887 = vmatpush3.bf16.msra.mxu1 %v3886_v21 }
  0x30   :  { %3423 = vmatmul.mubr.msk.f32.gmra.mrb[4].mxu0 %vm126_vm4, %v243_v38  ;;  %v245_v38 = vcombine.low %v4486_v32, %v4505_v41  ;;  %v414_v34 = vcombine.low %v368_v7, %v371_v26  ;;  %v385_v7 = vrot.slane %v4482_v28, 6  ;;  %v392_v28 = vrot.slane %v4505_v41, 6  ;;  %3888 = vmatprep.subr.bf16.mxu1 %v4341_v3  ;;  %v3050_v41 = vld [vmem:[%s5932_s3 + $0x80] sm:$0xff] }
  0x31   :  { %3425 = vmatprep.mubr.msk.f32.mxu0 %vm4342_vm0, %v4343_v6 }
  0x34   :  { %3426 = vmatmul.mubr.msk.f32.gmra.mrb[6].mxu0 %vm126_vm4, %v244_v51  ;;  %v3871_v51 = vpack.c.bf16 %v2994_v13, %v2993_v27  ;;  %v389_v13 = vrot.slane %v4486_v32, 6 }
  0x35   :  { %3428 = vmatprep.mubr.msk.f32.mxu0 %vm4342_vm0, %v4343_v6 }
  0x38   :  { %3429 = vmatmul.mubr.msk.f32.gmra.mrb[8].mxu0 %vm126_vm4, %v245_v38  ;;  %v382_v38 = vrot.slane %v4475_v24, 6  ;;  %v3049_v24 = vld [vmem:[%s5932_s3 + $0x78] sm:$0xff] }
  0x39   :  { %3431 = vmatprep.mubr.msk.f32.mxu0 %vm4342_vm0, %v4343_v6 }
  0x3a   :  { %v384_v27 = vrot.slane %v382_v38, 4  ;;  %v383_v31 = vsel %vm4734_vm10, %v381_v60, %v382_v38  ;;  %v394_v38 = vrot.slane %v392_v28, 4  ;;  %v401_v60 = vrot.slane %v4538_v59, 6  ;;  %v3052_v59 = vld [vmem:[%s5932_s3 + $0x90] sm:$0xff] }
  0x3c   :  { %3432 = vmatmul.mubr.msk.f32.gmra.mrb[10].mxu0 %vm126_vm4, %v246_v57  ;;  %v377_v57 = vsel %vm4734_vm10, %v375_v33, %v376_v22  ;;  %v380_v22 = vsel %vm4734_vm10, %v378_v58, %v379_v23  ;;  %v386_v32 = vsel %vm4734_vm10, %v384_v27, %v385_v7  ;;  %v391_v23 = vrot.slane %v389_v13, 4 }
  0x3d   :  { %3434 = vmatprep.mubr.msk.f32.mxu0 %vm4342_vm0, %v4343_v6  ;;  %v415_v26 = vcombine.low %v374_v56, %v377_v57  ;;  %v395_v56 = vrot.slane %v4519_v50, 6  ;;  %v398_v57 = vrot.slane %v4526_v52, 6  ;;  %v3889_v50 = vpack.c.bf16 %v3050_v41, %v3049_v24  ;;  %v3051_v52 = vld [vmem:[%s5932_s3 + $0x88] sm:$0xff] }
  0x3f   :  { %v396_v7 = vsel %vm4734_vm10, %v394_v38, %v395_v56  ;;  %v400_v27 = vrot.slane %v398_v57, 4  ;;  %v3004_v38 = vld [vmem:[%s5930_s1 + $0x80] sm:$0xff]  ;;  %3890 = vmatpush3.bf16.msra.mxu1 %v3889_v50 }
  0x40   :  { %3435 = vmatmul.mubr.msk.f32.gmra.mrb[12].mxu0 %vm126_vm4, %v247_v19  ;;  %v2996_v19 = vld [vmem:[%s5930_s1 + $0x78] sm:$0xff]  ;;  %3891 = vmatprep.subr.bf16.mxu1 %v4341_v3 }
  0x41   :  { %3445 = vmatprep.mubr.msk.f32.mxu0 %vm4342_vm0, %v4343_v6  ;;  %v3874_v33 = vpack.c.bf16 %v2996_v19, %v2995_v16  ;;  %v404_v16 = vrot.slane %v4544_v61, 6  ;;  %v393_v19 = vsel %vm4734_vm10, %v391_v23, %v392_v28  ;;  %v3892_v61 = vpack.c.bf16 %v3052_v59, %v3051_v52 }
  0x43   :  { %v406_v28 = vrot.slane %v404_v16, 4  ;;  %3893 = vmatpush3.bf16.msra.mxu1 %v3892_v61 }
  0x44   :  { %3446 = vmatmul.mubr.msk.f32.vlgmr.msra.gmra.mrb[0].mxu0 %vm126_vm4, %v414_v34  ;;  %v416_v34 = vcombine.low %v380_v22, %v383_v31  ;;  %v402_v31 = vsel %vm4734_vm10, %v400_v27, %v401_v60  ;;  %3894 = vmatprep.subr.bf16.mxu1 %v4341_v3 }
  0x45   :  { %3872 = vmatpush3.bf16.msra.mxu0 %v3871_v51  ;;  %3448 = vmatprep.mubr.msk.f32.mxu0 %vm4342_vm0, %v4343_v6  ;;  %v390_v51 = vsel %vm4734_vm10, %v2979_v17, %v389_v13  ;;  %v418_v17 = vcombine.low %v393_v19, %v396_v7  ;;  %v407_v13 = vrot.slane %v4552_v0, 6  ;;  %v3053_v0 = vld [vmem:[%s5932_s3 + $0x98] sm:$0xff]  ;;  %v5014_v19 = vld [vmem:[%s5932_s3 + $0x28] sm:$0xff]  ;;  %v5016_v7 = vsub.s32 0, %v867_v4 }
  0x46   :  { %3873 = vmatprep.subr.bf16.mxu0 %v4341_v3  ;;  %v417_v58 = vcombine.low %v386_v32, %v390_v51  ;;  %v3895_v49 = vpack.c.bf16 %v3054_v36, %v3053_v0 }
  0x47   :  { %v408_v51 = vsel %vm4734_vm10, %v406_v28, %v407_v13  ;;  %v3898_v13 = vpack.c.bf16 %v4987_v44, %v4982_v43 }
  0x48   :  { %3449 = vmatmul.mubr.msk.f32.gmra.mrb[2].mxu0 %vm126_vm4, %v415_v26  ;;  %v397_v26 = vrot.slane %v395_v56, 4  ;;  %v3005_v56 = vld [vmem:[%s5930_s1 + $0x88] sm:$0xff]  ;;  %3896 = vmatpush3.bf16.msra.mxu1 %v3895_v49 }
  0x49   :  { %3451 = vmatprep.mubr.msk.f32.mxu0 %vm4342_vm0, %v4343_v6  ;;  %3875 = vmatpush3.bf16.msra.mxu0 %v3874_v33  ;;  %v403_v33 = vrot.slane %v401_v60, 4  ;;  %v3877_v18 = vpack.c.bf16 %v3005_v56, %v3004_v38 }
  0x4a   :  { %3876 = vmatprep.subr.bf16.mxu0 %v4341_v3  ;;  %v399_v22 = vsel %vm4734_vm10, %v397_v26, %v398_v57  ;;  %v3006_v57 = vld [vmem:[%s5930_s1 + $0x90] sm:$0xff]  ;;  %3544 = vmatprep.subr.mxu1 %v4343_v6 }
  0x4b   :  { %v405_v32 = vsel %vm4734_vm10, %v403_v33, %v404_v16  ;;  %v5009_v16 = vld [vmem:[%s5932_s3 + $0x20] sm:$0xff] }
  0x4c   :  { %3452 = vmatmul.mubr.msk.f32.gmra.mrb[4].mxu0 %vm126_vm4, %v416_v34  ;;  %v419_v34 = vcombine.low %v399_v22, %v402_v31  ;;  %v420_v23 = vcombine.low %v405_v32, %v408_v51  ;;  %v5029_v32 = vld [vmem:[%s5932_s3 + $0x30] sm:$0xff]  ;;  %v5034_v51 = vld [vmem:[%s5932_s3 + $0x38] sm:$0xff] }
  0x4d   :  { %3454 = vmatprep.mubr.msk.f32.mxu0 %vm4342_vm0, %v4343_v6  ;;  %v3907_v21 = vpack.c.bf16 %v5034_v51, %v5029_v32 }
  0x50   :  { %3455 = vmatmul.mubr.msk.f32.gmra.mrb[6].mxu0 %vm126_vm4, %v417_v58  ;;  %v3007_v58 = vld [vmem:[%s5930_s1 + $0x98] sm:$0xff] }
  0x51   :  { %3457 = vmatprep.mubr.msk.f32.mxu0 %vm4342_vm0, %v4343_v6  ;;  %v3880_v60 = vpack.c.bf16 %v3007_v58, %v3006_v57 }
  0x54   :  { %3458 = vmatmul.mubr.msk.f32.gmra.mrb[8].mxu0 %vm126_vm4, %v418_v17 }
  0x55   :  { %3460 = vmatprep.mubr.msk.f32.mxu0 %vm4342_vm0, %v4343_v6 }
  0x58   :  { %3461 = vmatmul.mubr.msk.f32.gmra.mrb[10].mxu0 %vm126_vm4, %v419_v34 }
  0x59   :  { %3463 = vmatprep.mubr.msk.f32.mxu0 %vm4342_vm0, %v4343_v6 }
  0x5c   :  { %3464 = vmatmul.mubr.msk.f32.gmra.mrb[12].mxu0 %vm126_vm4, %v420_v23 }
  0x5d   :  { %3474 = vmatprep.mubr.msk.f32.mxu0 %vm4342_vm0, %v4343_v6 }
  0x60   :  { %3475 = vmatmul.mubr.msk.f32.vlgmr.msra.gmra.mrb[0].mxu0 %vm126_vm4, %v594_v55  ;;  %v3055_v55 = vld [vmem:[%s5932_s3 + $0xa8] sm:$0xf] }
  0x61   :  { %3878 = vmatpush3.bf16.msra.mxu0 %v3877_v18  ;;  %3477 = vmatprep.mubr.msk.f32.mxu0 %vm4342_vm0, %v4343_v6  ;;  %v3904_v18 = vpack.c.bf16 %v5014_v19, %v5009_v16 }
  0x62   :  { %3879 = vmatprep.subr.bf16.mxu0 %v4341_v3  ;;  %3545 = vmatpush3.msk.msra.mxu1 %vm1477_vm11, %v3055_v55 }
  0x63   :  { %3897 = vmatprep.subr.bf16.mxu1 %v4341_v3 }
  0x64   :  { %3478 = vmatmul.mubr.msk.f32.gmra.mrb[2].mxu0 %vm126_vm4, %v595_v2  ;;  %v865_v2 = vunpack.c.0.s8 %v864_v63 }
  0x65   :  { %3480 = vmatprep.mubr.msk.f32.mxu0 %vm4342_vm0, %v4343_v6  ;;  %3881 = vmatpush3.bf16.msra.mxu0 %v3880_v60 }
  0x66   :  { %3972 = vmatprep.subr.bf16.mxu0 %v4341_v3 }
  0x68   :  { %3481 = vmatmul.mubr.msk.f32.gmra.mrb[4].mxu0 %vm126_vm4, %v596_v11  ;;  %v4962_v11 = vsub.s32 %v865_v2, %v867_v4 }
  0x69   :  { %3483 = vmatprep.mubr.msk.f32.mxu0 %vm4342_vm0, %v4343_v6 }
  0x6a   :  { %v4968_v25 = vrot.slane %v1127_v10, %v4962_v11 }
  0x6c   :  { %3484 = vmatmul.mubr.msk.f32.gmra.mrb[6].mxu0 %vm126_vm4, %v597_v12  ;;  %v4965_v12 = vrot.slane %v3044_v5, %v4962_v11  ;;  %v5019_v27 = vrot.slane %v4968_v25, 1 }
  0x6d   :  { %3486 = vmatprep.mubr.msk.f32.mxu0 %vm4342_vm0, %v4343_v6 }
  0x70   :  { %3487 = vmatmul.mubr.msk.f32.gmra.mrb[8].mxu0 %vm126_vm4, %v598_v35 }
  0x71   :  { %3489 = vmatprep.mubr.msk.f32.mxu0 %vm4342_vm0, %v4343_v6 }
  0x74   :  { %3490 = vmatmul.mubr.msk.f32.gmra.mrb[10].mxu0 %vm126_vm4, %v599_v45  ;;  %v4990_v45 = vrot.slane %v4965_v12, 1 }
  0x75   :  { %3492 = vmatprep.mubr.msk.f32.mxu0 %vm4342_vm0, %v4343_v6 }
  0x78   :  { %3493 = vmatmul.mubr.msk.f32.gmra.mrb[12].mxu0 %vm126_vm4, %v600_v53 }
  0x79   :  { %3503 = vmatprep.mubr.msk.f32.mxu0 %vm4342_vm0, %v4343_v6 }
  0x7c   :  { %3504 = vmatmul.mubr.msk.f32.vlgmr.msra.gmra.mrb[0].mxu0 %vm126_vm4, %v727_v29  ;;  %v4972_v29 = vcombine.high %v4965_v12, %v4965_v12 }
  0x7d   :  { %3506 = vmatprep.mubr.msk.f32.mxu0 %vm4342_vm0, %v4343_v6 }
  0x80   :  { %3507 = vmatmul.mubr.msk.f32.gmra.mrb[2].mxu0 %vm126_vm4, %v728_v39  ;;  %v4976_v39 = vcombine.high %v4968_v25, %v4968_v25 }
  0x81   :  { %3509 = vmatprep.mubr.msk.f32.mxu0 %vm4342_vm0, %v4343_v6 }
  0x82   :  { %v5022_v17 = vrot.slane %v4976_v39, 1 }
  0x84   :  { %3510 = vmatmul.mubr.msk.f32.gmra.mrb[4].mxu0 %vm126_vm4, %v729_v40 }
  0x85   :  { %3512 = vmatprep.mubr.msk.f32.mxu0 %vm4342_vm0, %v4343_v6 }
  0x88   :  { %3513 = vmatmul.mubr.msk.f32.gmra.mrb[6].mxu0 %vm126_vm4, %v3008_v47 }
  0x89   :  { %3515 = vmatprep.mubr.msk.f32.mxu0 %vm4342_vm0, %v4343_v6 }
  0x8c   :  { %3516 = vmatmul.mubr.msk.f32.gmra.mrb[8].mxu0 %vm126_vm4, %v731_v48 }
  0x8d   :  { %3518 = vmatprep.mubr.msk.f32.mxu0 %vm4342_vm0, %v4343_v6 }
  0x90   :  { %3519 = vmatmul.mubr.msk.f32.gmra.mrb[10].mxu0 %vm126_vm4, %v732_v30  ;;  %v4999_v30 = vrot.slane %v4972_v29, 1 }
  0x91   :  { %3521 = vmatprep.mubr.msk.f32.mxu0 %vm4342_vm0, %v4343_v6 }
  0x94   :  { %3522 = vmatmul.mubr.msk.f32.gmra.mrb[12].mxu0 %vm126_vm4, %v733_v54  ;;  %v5004_v54 = vld [vmem:[%s5932_s3 + $0x18] sm:$0xff]  ;;  %vm2292_vm4 = vcmask 654336  }
  0x95   :  { %3722 = vmatprep.mubr.msk.f32.mxu0 %vm4342_vm0, %v4343_v6  ;;  %v3901_v56 = vpack.c.bf16 %v5004_v54, %v4995_v46 }
 0x14f   :  { %v814_v37 = vpop.f32.mrb[0].mxu0 }
 0x150   :  { %v862_v40 = vcombine.high %v814_v37, %v814_v37  ;;  %v869_v35 = vrot.slane %v814_v37, %v4962_v11  ;;  %v3505_v42 = vpop.f32.mrb[1].mxu0 }
 0x152   :  { %v876_v47 = vrot.slane %v862_v40, %v4962_v11  ;;  %v877_v48 = vcombine.high %v869_v35, %v869_v35  ;;  %v3016_v53 = vrot.slane %v869_v35, 9 }
 0x153   :  { %v819_v26 = vpop.f32.mrb[2].mxu0 }
 0x154   :  { %v878_v22 = vcombine.high %v876_v47, %v876_v47  ;;  %v3017_v31 = vrot.slane %v877_v48, 9  ;;  %v3018_v33 = vrot.slane %v876_v47, 9  ;;  %v1093_v28 = vadd.f32 %v3016_v53, %v869_v35  ;;  %v3508_v34 = vpop.f32.mrb[3].mxu0 }
 0x155   :  { %v879_v23 = vcombine.high %v819_v26, %v819_v26  ;;  %v886_v38 = vrot.slane %v819_v26, %v4962_v11 }
 0x156   :  { %v3019_v57 = vrot.slane %v878_v22, 9  ;;  %v1094_v58 = vadd.f32 %v3017_v31, %v877_v48  ;;  %v1095_v60 = vadd.f32 %v3018_v33, %v876_v47  ;;  %v1156_v8 = vadd.f32 %v4965_v12, %v1093_v28 }
 0x157   :  { %v893_v9 = vrot.slane %v879_v23, %v4962_v11  ;;  %v894_v14 = vcombine.high %v886_v38, %v886_v38  ;;  %v3020_v15 = vrot.slane %v886_v38, 9  ;;  %v824_v20 = vpop.f32.mrb[4].mxu0 }
 0x158   :  { %v1096_v24 = vadd.f32 %v3019_v57, %v878_v22  ;;  %v1157_v41 = vadd.f32 %v4990_v45, %v1094_v58  ;;  %v1158_v50 = vadd.f32 %v4972_v29, %v1095_v60  ;;  %v1184_v52 = vsub.f32 0.0, %v1156_v8  ;;  %v3511_v59 = vpop.f32.mrb[5].mxu0 }
 0x159   :  { %v895_v61 = vcombine.high %v893_v9, %v893_v9  ;;  %v3021_v0 = vrot.slane %v894_v14, 9  ;;  %v3022_v36 = vrot.slane %v893_v9, 9  ;;  %v1097_v49 = vadd.f32 %v3020_v15, %v886_v38 }
 0x15a   :  { %v1159_v55 = vadd.f32 %v4999_v30, %v1096_v24  ;;  %v1185_v62 = vsub.f32 0.0, %v1157_v41  ;;  %v1186_v63 = vsub.f32 0.0, %v1158_v50  ;;  %v1212_v1 = vmul.f32 1.442695, %v1184_v52 }
 0x15b   :  { %v3023_v2 = vrot.slane %v895_v61, 9  ;;  %v1098_v4 = vadd.f32 %v3021_v0, %v894_v14  ;;  %v1099_v5 = vadd.f32 %v3022_v36, %v893_v9  ;;  %v1160_v10 = vadd.f32 %v4968_v25, %v1097_v49  ;;  %v829_v37 = vpop.f32.mrb[6].mxu0 }
 0x15c   :  { %v1187_v40 = vsub.f32 0.0, %v1159_v55  ;;  %4163 = vpow2.f32 %v1212_v1  ;;  %v1214_v35 = vmul.f32 1.442695, %v1185_v62  ;;  %v1216_v42 = vmul.f32 1.442695, %v1186_v63  ;;  %v3514_v47 = vpop.f32.mrb[7].mxu0 }
 0x15d   :  { %v1100_v48 = vadd.f32 %v3023_v2, %v895_v61  ;;  %v1161_v53 = vadd.f32 %v5019_v27, %v1098_v4  ;;  %v1162_v26 = vadd.f32 %v4976_v39, %v1099_v5  ;;  %v1188_v22 = vsub.f32 0.0, %v1160_v10 }
 0x15e   :  { %4165 = vpow2.f32 %v1214_v35  ;;  %v1218_v31 = vmul.f32 1.442695, %v1187_v40  ;;  %v896_v33 = vcombine.high %v824_v20, %v824_v20  ;;  %v903_v28 = vrot.slane %v824_v20, %v4962_v11 }
 0x15f   :  { %4167 = vpow2.f32 %v1216_v42  ;;  %v1163_v34 = vadd.f32 %v5022_v17, %v1100_v48  ;;  %v1189_v23 = vsub.f32 0.0, %v1161_v53  ;;  %v1190_v38 = vsub.f32 0.0, %v1162_v26  ;;  %v5053_v57 = vpop.f32.mrb[8].mxu0 }
 0x160   :  { %4169 = vpow2.f32 %v1218_v31  ;;  %v1220_v58 = vmul.f32 1.442695, %v1188_v22  ;;  %v910_v60 = vrot.slane %v896_v33, %v4962_v11  ;;  %v911_v8 = vcombine.high %v903_v28, %v903_v28  ;;  %v3517_v9 = vpop.f32.mrb[9].mxu0 }
 0x161   :  { %v1191_v14 = vsub.f32 0.0, %v1163_v34  ;;  %v1222_v15 = vmul.f32 1.442695, %v1189_v23  ;;  %v1224_v24 = vmul.f32 1.442695, %v1190_v38  ;;  %v3024_v41 = vrot.slane %v903_v28, 9 }
 0x162   :  { %4171 = vpow2.f32 %v1220_v58  ;;  %v912_v50 = vcombine.high %v910_v60, %v910_v60  ;;  %v3025_v20 = vrot.slane %v911_v8, 9  ;;  %v3026_v52 = vrot.slane %v910_v60, 9 }
 0x163   :  { %4173 = vpow2.f32 %v1222_v15  ;;  %v1226_v59 = vmul.f32 1.442695, %v1191_v14  ;;  %v1101_v61 = vadd.f32 %v3024_v41, %v903_v28  ;;  %v913_v0 = vcombine.high %v829_v37, %v829_v37  ;;  %v5056_v36 = vpop.f32.mrb[10].mxu0 }
 0x164   :  { %4175 = vpow2.f32 %v1224_v24  ;;  %v3027_v49 = vrot.slane %v912_v50, 9  ;;  %v1102_v55 = vadd.f32 %v3025_v20, %v911_v8  ;;  %v1103_v62 = vadd.f32 %v3026_v52, %v910_v60  ;;  %v3520_v63 = vpop.f32.mrb[11].mxu0 }
 0x165   :  { %4177 = vpow2.f32 %v1226_v59  ;;  %v1164_v1 = vadd.f32 %v4965_v12, %v1101_v61  ;;  %v920_v2 = vrot.slane %v829_v37, %v4962_v11  ;;  %v927_v4 = vrot.slane %v913_v0, %v4962_v11 }
 0x166   :  { %v4164_v5 = vpop.eup %4163  ;;  %v1104_v10 = vadd.f32 %v3027_v49, %v912_v50  ;;  %v1165_v40 = vadd.f32 %v4990_v45, %v1102_v55  ;;  %v1166_v35 = vadd.f32 %v4972_v29, %v1103_v62  ;;  %v930_v42 = vcombine.high %v5053_v57, %v5053_v57 }
 0x167   :  { %v1268_v47 = vadd.f32 1.0, %v4164_v5  ;;  %v1192_v48 = vsub.f32 0.0, %v1164_v1  ;;  %v928_v53 = vcombine.high %v920_v2, %v920_v2  ;;  %v929_v26 = vcombine.high %v927_v4, %v927_v4  ;;  %v5065_v22 = vpop.f32.mrb[12].mxu0 }
 0x168   :  { %v4166_v31 = vpop.eup %4165  ;;  %v1167_v37 = vadd.f32 %v4999_v30, %v1104_v10  ;;  %v1193_v33 = vsub.f32 0.0, %v1165_v40  ;;  %v1194_v28 = vsub.f32 0.0, %v1166_v35  ;;  %v3028_v34 = vrot.slane %v920_v2, 9  ;;  %v3523_v23 = vpop.f32.mrb[13].mxu0 }
 0x169   :  { %v4168_v38 = vpop.eup %4167  ;;  %v1269_v58 = vadd.f32 1.0, %v4166_v31  ;;  %4179 = vrcp.f32 %v1268_v47  ;;  %v1228_v60 = vmul.f32 1.442695, %v1192_v48  ;;  %v3029_v8 = vrot.slane %v928_v53, 9 }
 0x16a   :  { %v4170_v9 = vpop.eup %4169  ;;  %v1270_v14 = vadd.f32 1.0, %v4168_v38  ;;  %v1195_v15 = vsub.f32 0.0, %v1167_v37  ;;  %v1230_v24 = vmul.f32 1.442695, %v1193_v33  ;;  %v1232_v41 = vmul.f32 1.442695, %v1194_v28 }
 0x16b   :  { %v1271_v50 = vadd.f32 1.0, %v4170_v9  ;;  %4181 = vrcp.f32 %v1269_v58  ;;  %v3030_v20 = vrot.slane %v927_v4, 9  ;;  %v3031_v52 = vrot.slane %v929_v26, 9 }
 0x16c   :  { %v4172_v59 = vpop.eup %4171  ;;  %4183 = vrcp.f32 %v1270_v14  ;;  %v1234_v61 = vmul.f32 1.442695, %v1195_v15  ;;  %v1105_v0 = vadd.f32 %v3028_v34, %v920_v2  ;;  %v1106_v49 = vadd.f32 %v3029_v8, %v928_v53  ;;  %v5075_v53 = vld [vmem:[%s5932_s3 + $0x40] sm:$0xff] }
 0x16d   :  { %v4174_v55 = vpop.eup %4173  ;;  %4185 = vrcp.f32 %v1271_v50  ;;  %v1272_v62 = vadd.f32 1.0, %v4172_v59  ;;  %v1107_v63 = vadd.f32 %v3030_v20, %v927_v4  ;;  %v1108_v1 = vadd.f32 %v3031_v52, %v929_v26  ;;  %v5080_v4 = vld [vmem:[%s5932_s3 + $0x48] sm:$0xff] }
 0x16e   :  { %v4176_v5 = vpop.eup %4175  ;;  %v1273_v10 = vadd.f32 1.0, %v4174_v55  ;;  %4187 = vpow2.f32 %v1228_v60  ;;  %v1168_v40 = vadd.f32 %v4968_v25, %v1105_v0  ;;  %v1169_v35 = vadd.f32 %v5019_v27, %v1106_v49 }
 0x16f   :  { %v4178_v47 = vpop.eup %4177  ;;  %v1274_v48 = vadd.f32 1.0, %v4176_v5  ;;  %4189 = vrcp.f32 %v1272_v62  ;;  %v1170_v31 = vadd.f32 %v4976_v39, %v1107_v63  ;;  %v1171_v2 = vadd.f32 %v5022_v17, %v1108_v1 }
 0x170   :  { %v1275_v26 = vadd.f32 1.0, %v4178_v47  ;;  %4191 = vrcp.f32 %v1273_v10  ;;  %v1196_v37 = vsub.f32 0.0, %v1168_v40  ;;  %v1197_v33 = vsub.f32 0.0, %v1169_v35 }
 0x171   :  { %4193 = vrcp.f32 %v1274_v48  ;;  %v1198_v28 = vsub.f32 0.0, %v1170_v31  ;;  %v1199_v34 = vsub.f32 0.0, %v1171_v2  ;;  %v937_v23 = vrot.slane %v5053_v57, %v4962_v11 }
 0x172   :  { %4195 = vrcp.f32 %v1275_v26  ;;  %v1236_v38 = vmul.f32 1.442695, %v1196_v37  ;;  %v944_v58 = vrot.slane %v930_v42, %v4962_v11  ;;  %v3910_v60 = vpack.c.bf16 %v5080_v4, %v5075_v53 }
 0x173   :  { %v5087_v8 = vpop.eup %4179  ;;  %4197 = vpow2.f32 %v1230_v24  ;;  %v1238_v9 = vmul.f32 1.442695, %v1197_v33  ;;  %v1240_v14 = vmul.f32 1.442695, %v1198_v28  ;;  %v945_v15 = vcombine.high %v937_v23, %v937_v23 }
 0x174   :  { %4199 = vpow2.f32 %v1232_v41  ;;  %v1242_v50 = vmul.f32 1.442695, %v1199_v34  ;;  %v946_v20 = vcombine.high %v944_v58, %v944_v58  ;;  %v3032_v52 = vrot.slane %v937_v23, 9 }
 0x175   :  { %v5089_v59 = vpop.eup %4181  ;;  %4201 = vpow2.f32 %v1234_v61  ;;  %v3033_v57 = vrot.slane %v945_v15, 9  ;;  %v3034_v0 = vrot.slane %v944_v58, 9  ;;  %v947_v42 = vcombine.high %v5056_v36, %v5056_v36 }
 0x176   :  { %v5093_v49 = vpop.eup %4183  ;;  %4203 = vpow2.f32 %v1236_v38  ;;  %v3035_v55 = vrot.slane %v946_v20, 9  ;;  %v1109_v24 = vadd.f32 %v3032_v52, %v937_v23  ;;  %v954_v62 = vrot.slane %v5056_v36, %v4962_v11 }
 0x177   :  { %v5097_v41 = vpop.eup %4185  ;;  %4205 = vpow2.f32 %v1238_v9  ;;  %v1110_v63 = vadd.f32 %v3033_v57, %v945_v15  ;;  %v1111_v1 = vadd.f32 %v3034_v0, %v944_v58  ;;  %v961_v61 = vrot.slane %v947_v42, %v4962_v11 }
 0x178   :  { %v4188_v5 = vpop.eup %4187  ;;  %4207 = vpow2.f32 %v1240_v14  ;;  %v1112_v10 = vadd.f32 %v3035_v55, %v946_v20  ;;  %v1172_v40 = vadd.f32 %v4965_v12, %v1109_v24  ;;  %v962_v35 = vcombine.high %v954_v62, %v954_v62 }
 0x179   :  { %v4190_v47 = vpop.eup %4189  ;;  %v1276_v48 = vadd.f32 1.0, %v4188_v5  ;;  %4209 = vpow2.f32 %v1242_v50  ;;  %v1173_v31 = vadd.f32 %v4990_v45, %v1110_v63  ;;  %v1174_v36 = vadd.f32 %v4972_v29, %v1111_v1 }
 0x17a   :  { %v5103_v2 = vpop.eup %4191  ;;  %v1566_v26 = vrot.slane %v5087_v8, %v5016_v7  ;;  %v1175_v37 = vadd.f32 %v4999_v30, %v1112_v10  ;;  %v1200_v33 = vsub.f32 0.0, %v1172_v40  ;;  %v963_v28 = vcombine.high %v961_v61, %v961_v61 }
 0x17b   :  { %v5108_v34 = vpop.eup %4193  ;;  %v5111_v23 = vrot.slane %v4190_v47, %v5016_v7  ;;  %v1201_v38 = vsub.f32 0.0, %v1173_v31  ;;  %v1202_v58 = vsub.f32 0.0, %v1174_v36  ;;  %v3036_v9 = vrot.slane %v954_v62, 9 }
 0x17c   :  { %v5113_v14 = vpop.eup %4195  ;;  %4211 = vrcp.f32 %v1276_v48  ;;  %v1244_v15 = vmul.f32 1.442695, %v1200_v33  ;;  %v3037_v50 = vrot.slane %v962_v35, 9  ;;  %v3038_v20 = vrot.slane %v961_v61, 9 }
 0x17d   :  { %v4198_v52 = vpop.eup %4197  ;;  %v1203_v57 = vsub.f32 0.0, %v1175_v37  ;;  %v1246_v0 = vmul.f32 1.442695, %v1201_v38  ;;  %v3039_v42 = vrot.slane %v963_v28, 9  ;;  %v1113_v55 = vadd.f32 %v3036_v9, %v954_v62 }
 0x17e   :  { %v4200_v24 = vpop.eup %4199  ;;  %v1277_v63 = vadd.f32 1.0, %v4198_v52  ;;  %4213 = vpow2.f32 %v1244_v15  ;;  %v1248_v1 = vmul.f32 1.442695, %v1202_v58  ;;  %v1114_v5 = vadd.f32 %v3037_v50, %v962_v35 }
 0x17f   :  { %v4202_v10 = vpop.eup %4201  ;;  %v1278_v40 = vadd.f32 1.0, %v4200_v24  ;;  %4215 = vpow2.f32 %v1246_v0  ;;  %v1115_v47 = vadd.f32 %v3038_v20, %v961_v61  ;;  %v1116_v31 = vadd.f32 %v3039_v42, %v963_v28 }
 0x180   :  { %v4204_v36 = vpop.eup %4203  ;;  %v1279_v48 = vadd.f32 1.0, %v4202_v10  ;;  %4217 = vrcp.f32 %v1277_v63  ;;  %v1176_v33 = vadd.f32 %v4968_v25, %v1113_v55  ;;  %v1177_v37 = vadd.f32 %v5019_v27, %v1114_v5 }
 0x181   :  { %v4206_v38 = vpop.eup %4205  ;;  %4219 = vrcp.f32 %v1278_v40  ;;  %v1280_v62 = vadd.f32 1.0, %v4204_v36  ;;  %v1178_v9 = vadd.f32 %v4976_v39, %v1115_v47  ;;  %v1179_v58 = vadd.f32 %v5022_v17, %v1116_v31 }
 0x182   :  { %v4208_v35 = vpop.eup %4207  ;;  %4221 = vrcp.f32 %v1279_v48  ;;  %v1250_v15 = vmul.f32 1.442695, %v1203_v57  ;;  %v1204_v50 = vsub.f32 0.0, %v1176_v33  ;;  %v1205_v61 = vsub.f32 0.0, %v1177_v37 }
 0x183   :  { %v4210_v28 = vpop.eup %4209  ;;  %v5119_v20 = vadd.f32 1.0, %v4206_v38  ;;  %v1282_v52 = vadd.f32 1.0, %v4208_v35  ;;  %v1206_v0 = vsub.f32 0.0, %v1178_v9  ;;  %v1207_v25 = vsub.f32 0.0, %v1179_v58 }
 0x184   :  { %v1283_v27 = vadd.f32 1.0, %v4210_v28  ;;  %4223 = vrcp.f32 %v1280_v62  ;;  %v1252_v42 = vmul.f32 1.442695, %v1204_v50  ;;  %v1254_v55 = vmul.f32 1.442695, %v1205_v61 }
 0x185   :  { %4225 = vrcp.f32 %v1282_v52  ;;  %v1256_v39 = vmul.f32 1.442695, %v1206_v0  ;;  %v1258_v17 = vmul.f32 1.442695, %v1207_v25  ;;  %v964_v57 = vcombine.high %v5065_v22, %v5065_v22 }
 0x186   :  { %v4212_v24 = vpop.eup %4211  ;;  %4227 = vrcp.f32 %v1283_v27  ;;  %v971_v63 = vrot.slane %v5065_v22, %v4962_v11  ;;  %v1370_v5 = vrot.slane %v5089_v59, %v5016_v7  ;;  %v5129_v10 = vrot.slane %v5093_v49, %v5016_v7 }
 0x187   :  { %4229 = vpow2.f32 %v1248_v1  ;;  %v978_v40 = vrot.slane %v964_v57, %v4962_v11  ;;  %v5134_v47 = vrot.slane %v5097_v41, %v5016_v7  ;;  %v5138_v31 = vrot.slane %v5103_v2, %v5016_v7 }
 0x188   :  { %v4214_v22 = vpop.eup %4213  ;;  %4231 = vpow2.f32 %v1250_v15  ;;  %v979_v36 = vcombine.high %v971_v63, %v971_v63  ;;  %v3040_v59 = vrot.slane %v971_v63, 9  ;;  %v5142_v49 = vrot.slane %v5108_v34, %v5016_v7 }
 0x189   :  { %v4216_v1 = vpop.eup %4215  ;;  %v1284_v48 = vadd.f32 1.0, %v4214_v22  ;;  %4233 = vpow2.f32 %v1252_v42  ;;  %v980_v33 = vcombine.high %v978_v40, %v978_v40  ;;  %v3042_v41 = vrot.slane %v978_v40, 9 }
 0x18a   :  { %v4218_v37 = vpop.eup %4217  ;;  %v1285_v38 = vadd.f32 1.0, %v4216_v1  ;;  %4235 = vpow2.f32 %v1254_v55  ;;  %v3041_v2 = vrot.slane %v979_v36, 9  ;;  %v1117_v62 = vadd.f32 %v3040_v59, %v971_v63 }
 0x18b   :  { %v4220_v9 = vpop.eup %4219  ;;  %v5145_v58 = vrot.slane %v4218_v37, %v5016_v7  ;;  %4237 = vrcp.f32 %v1284_v48  ;;  %v3043_v34 = vrot.slane %v980_v33, 9  ;;  %v1119_v35 = vadd.f32 %v3042_v41, %v978_v40 }
 0x18c   :  { %v5147_v15 = vpop.eup %4221  ;;  %4239 = vrcp.f32 %v1285_v38  ;;  %v1118_v50 = vadd.f32 %v3041_v2, %v979_v36  ;;  %v1180_v61 = vadd.f32 %v4965_v12, %v1117_v62  ;;  %v5152_v28 = vrot.slane %v5113_v14, %v5016_v7 }
 0x18d   :  { %4241 = vpow2.f32 %v1256_v39  ;;  %v1120_v52 = vadd.f32 %v3043_v34, %v980_v33  ;;  %v1182_v0 = vadd.f32 %v4972_v29, %v1119_v35  ;;  %v5156_v25 = vrot.slane %v4212_v24, %v5016_v7 }
 0x18e   :  { %v5158_v27 = vpop.eup %4223  ;;  %4243 = vpow2.f32 %v1258_v17  ;;  %v1181_v42 = vadd.f32 %v4990_v45, %v1118_v50  ;;  %v1208_v55 = vsub.f32 0.0, %v1180_v61  ;;  %v1448_v12 = vsel %vm1447_vm12, %v5129_v10, %v1370_v5 }
 0x18f   :  { %v5163_v57 = vpop.eup %4225  ;;  %v1183_v14 = vadd.f32 %v4999_v30, %v1120_v52  ;;  %v1210_v39 = vsub.f32 0.0, %v1182_v0  ;;  %v1450_v29 = vsel %vm1449_vm13, %v5134_v47, %v1448_v12  ;;  %v5169_v24 = vrot.slane %v4220_v9, %v5016_v7 }
 0x190   :  { %v4228_v63 = vpop.eup %4227  ;;  %v1209_v40 = vsub.f32 0.0, %v1181_v42  ;;  %v1260_v17 = vmul.f32 1.442695, %v1208_v55  ;;  %v1452_v45 = vsel %vm1451_vm14, %v5111_v23, %v1450_v29  ;;  %v1571_v22 = vsel %vm1447_vm12, %v1370_v5, %v1566_v26 }
 0x191   :  { %v4230_v36 = vpop.eup %4229  ;;  %v1211_v30 = vsub.f32 0.0, %v1183_v14  ;;  %v1264_v59 = vmul.f32 1.442695, %v1210_v39  ;;  %v1453_v1 = vsel %vm543_vm6, %v5138_v31, %v1452_v45  ;;  %v1410_v48 = vrot.slane %v4228_v63, %v5016_v7 }
 0x192   :  { %v4232_v33 = vpop.eup %4231  ;;  %v1286_v41 = vadd.f32 1.0, %v4230_v36  ;;  %4245 = vpow2.f32 %v1260_v17  ;;  %v1262_v37 = vmul.f32 1.442695, %v1209_v40  ;;  %v1455_v38 = vsel %vm1454_vm15, %v5142_v49, %v1453_v1 }
 0x193   :  { %v4234_v2 = vpop.eup %4233  ;;  %v1287_v62 = vadd.f32 1.0, %v4232_v33  ;;  %4247 = vpow2.f32 %v1264_v59  ;;  %v1266_v8 = vmul.f32 1.442695, %v1211_v30  ;;  %v1457_v26 = vsel %vm1456_vm1, %v5152_v28, %v1455_v38 }
 0x194   :  { %v4236_v5 = vpop.eup %4235  ;;  %4249 = vrcp.f32 %v1286_v41  ;;  %v1288_v9 = vadd.f32 1.0, %v4234_v2  ;;  %v1459_v34 = vsel %vm1458_vm2, %v5156_v25, %v1457_v26  ;;  %v1460_v35 = vsel %vm1447_vm12, %v5169_v24, %v5145_v58 }
 0x195   :  { %v4238_v50 = vpop.eup %4237  ;;  %4251 = vrcp.f32 %v1287_v62  ;;  %v1289_v61 = vadd.f32 1.0, %v4236_v5  ;;  %3547 = vmatmul.mubr.msk.f32.vlgmr.msra.gmra.mrb[0].mxu1 %vm1470_vm3, %v1459_v34  ;;  %v1461_v52 = vsel %vm1449_vm13, %v1410_v48, %v1460_v35  ;;  %v1572_v0 = vsel %vm1449_vm13, %v5129_v10, %v1571_v22 }
 0x196   :  { %v4240_v42 = vpop.eup %4239  ;;  %4253 = vrcp.f32 %v1288_v9  ;;  %3899 = vmatpush3.bf16.msra.mxu1 %v3898_v13  ;;  %3549 = vmatprep.mubr.msk.f32.mxu1 %vm4342_vm0, %v4343_v6  ;;  %v1414_v55 = vrot.slane %v4238_v50, %v5016_v7  ;;  %v1573_v12 = vsel %vm1451_vm14, %v5134_v47, %v1572_v0  ;;  %v1570_v14 = vrot.slane %v5163_v57, %v5016_v7 }
 0x197   :  { %v4242_v39 = vpop.eup %4241  ;;  %4255 = vrcp.f32 %v1289_v61  ;;  %3900 = vmatprep.subr.bf16.mxu1 %v4341_v3  ;;  %v5205_v29 = vrot.slane %v4240_v42, %v5016_v7  ;;  %v1574_v43 = vsel %vm543_vm6, %v5111_v23, %v1573_v12  ;;  %v1578_v44 = vsel %vm1447_vm12, %v5145_v58, %v5156_v25 }
 0x198   :  { %v4244_v13 = vpop.eup %4243  ;;  %v1290_v63 = vadd.f32 1.0, %v4242_v39  ;;  %4257 = vpow2.f32 %v1262_v37  ;;  %v1462_v40 = vsel %vm1451_vm14, %v1414_v55, %v1461_v52  ;;  %v1575_v57 = vsel %vm1454_vm15, %v5138_v31, %v1574_v43 }
 0x199   :  { %v1291_v17 = vadd.f32 1.0, %v4244_v13  ;;  %4259 = vpow2.f32 %v1266_v8  ;;  %v1463_v45 = vsel %vm543_vm6, %v5205_v29, %v1462_v40  ;;  %v1576_v22 = vsel %vm1456_vm1, %v5142_v49, %v1575_v57 }
 0x19a   :  { %4261 = vrcp.f32 %v1290_v63  ;;  %3902 = vmatpush3.bf16.msra.mxu1 %v3901_v56  ;;  %v5224_v36 = vsel %vm1458_vm2, %v5152_v28, %v1576_v22  ;;  %v1579_v30 = vsel %vm1449_vm13, %v1570_v14, %v1578_v44  ;;  %v1699_v59 = vsel %vm1447_vm12, %v5134_v47, %v5129_v10 }
 0x19b   :  { %4263 = vrcp.f32 %v1291_v17  ;;  %3903 = vmatprep.subr.bf16.mxu1 %v4341_v3  ;;  %v1580_v1 = vsel %vm1451_vm14, %v1410_v48, %v1579_v30  ;;  %v1700_v33 = vsel %vm1449_vm13, %v5111_v23, %v1699_v59  ;;  %v5236_v46 = vrot.slane %v5147_v15, %v5016_v7 }
 0x19c   :  { %v4246_v54 = vpop.eup %4245  ;;  %4265 = vrcp.f32 %v5119_v20  ;;  %v1581_v56 = vsel %vm543_vm6, %v1414_v55, %v1580_v1  ;;  %v1701_v10 = vsel %vm1451_vm14, %v5138_v31, %v1700_v33  ;;  %v1830_v41 = vsel %vm1447_vm12, %v5111_v23, %v5134_v47 }
 0x19d   :  { %v4248_v48 = vpop.eup %4247  ;;  %v1292_v37 = vadd.f32 1.0, %v4246_v54  ;;  %v1582_v38 = vsel %vm1454_vm15, %v5205_v29, %v1581_v56  ;;  %v1702_v15 = vsel %vm543_vm6, %v5142_v49, %v1701_v10  ;;  %v1706_v20 = vsel %vm1447_vm12, %v5236_v46, %v5169_v24 }
 0x19e   :  { %v4250_v2 = vpop.eup %4249  ;;  %v1294_v62 = vadd.f32 1.0, %v4248_v48  ;;  %3905 = vmatpush3.bf16.msra.mxu1 %v3904_v18  ;;  %v1703_v47 = vsel %vm1454_vm15, %v5152_v28, %v1702_v15  ;;  %v1707_v8 = vsel %vm1449_vm13, %v1414_v55, %v1706_v20  ;;  %v1831_v26 = vsel %vm1449_vm13, %v5138_v31, %v1830_v41 }
 0x19f   :  { %v4252_v5 = vpop.eup %4251  ;;  %4267 = vrcp.f32 %v1292_v37  ;;  %3906 = vmatprep.subr.bf16.mxu1 %v4341_v3  ;;  %v5262_v9 = vrot.slane %v4250_v2, %v5016_v7  ;;  %v1704_v34 = vsel %vm1456_vm1, %v5156_v25, %v1703_v47  ;;  %v1708_v16 = vsel %vm1451_vm14, %v5205_v29, %v1707_v8  ;;  %v3064_v47 = vld [vmem:[%s5932_s3 + $0xb0] sm:$0xff] }
 0x1a0   :  { %v4254_v19 = vpop.eup %4253  ;;  %4269 = vrcp.f32 %v1294_v62  ;;  %v5269_v18 = vrot.slane %v4252_v5, %v5016_v7  ;;  %v5273_v35 = vsel %vm1458_vm2, %v5145_v58, %v1704_v34  ;;  %v1832_v50 = vsel %vm1451_vm14, %v5142_v49, %v1831_v26 }
 0x1a1   :  { %v4256_v61 = vpop.eup %4255  ;;  %v5278_v52 = vrot.slane %v4254_v19, %v5016_v7  ;;  %v1464_v0 = vsel %vm1454_vm15, %v5262_v9, %v1463_v45  ;;  %v1583_v42 = vsel %vm1456_vm1, %v5262_v9, %v1582_v38  ;;  %v1709_v55 = vsel %vm543_vm6, %v5262_v9, %v1708_v16 }
 0x1a2   :  { %v4258_v12 = vpop.eup %4257  ;;  %v1465_v14 = vsel %vm1456_vm1, %v5269_v18, %v1464_v0  ;;  %3908 = vmatpush3.bf16.msra.mxu1 %v3907_v21  ;;  %v5292_v39 = vrot.slane %v4256_v61, %v5016_v7  ;;  %v5296_v43 = vsel %vm1458_vm2, %v5269_v18, %v1583_v42  ;;  %v1710_v44 = vsel %vm1454_vm15, %v5269_v18, %v1709_v55  ;;  %v3066_v61 = vld [vmem:[%s5932_s3 + $0xc0] sm:$0xff]  ;;  %v3067_v0 = vld [vmem:[%s5932_s3 + $0xc8] sm:$0xff] }
 0x1a3   :  { %v4260_v13 = vpop.eup %4259  ;;  %v1293_v63 = vadd.f32 1.0, %v4258_v12  ;;  %v1466_v40 = vsel %vm1458_vm2, %v5278_v52, %v1465_v14  ;;  %3909 = vmatprep.subr.bf16.mxu1 %v4341_v3  ;;  %v1711_v32 = vsel %vm1456_vm1, %v5278_v52, %v1710_v44  ;;  %v1833_v51 = vsel %vm543_vm6, %v5152_v28, %v1832_v50 }
 0x1a4   :  { %v4262_v21 = vpop.eup %4261  ;;  %v1295_v57 = vadd.f32 1.0, %v4260_v13  ;;  %3550 = vmatmul.mubr.msk.f32.gmra.mrb[2].mxu1 %vm1470_vm3, %v1466_v40  ;;  %v5310_v17 = vsel %vm1458_vm2, %v5292_v39, %v1711_v32  ;;  %v1834_v45 = vsel %vm1454_vm15, %v5156_v25, %v1833_v51  ;;  %v1825_v1 = vrot.slane %v5158_v27, %v5016_v7  ;;  %v1334_v27 = vld [vmem:[%s5932_s3 + $0x50] sm:$0xf] }
 0x1a5   :  { %v4264_v22 = vpop.eup %4263  ;;  %4271 = vrcp.f32 %v1293_v63  ;;  %3552 = vmatprep.mubr.msk.f32.mxu1 %vm4342_vm0, %v4343_v6  ;;  %v5317_v30 = vrot.slane %v4262_v21, %v5016_v7  ;;  %v1835_v59 = vsel %vm1456_vm1, %v5145_v58, %v1834_v45  ;;  %v1961_v38 = vsel %vm1447_vm12, %v5138_v31, %v5111_v23  ;;  %v3065_v23 = vld [vmem:[%s5932_s3 + $0xb8] sm:$0xff] }
 0x1a6   :  { %v4266_v33 = vpop.eup %4265  ;;  %4273 = vrcp.f32 %v1295_v57  ;;  %v5324_v54 = vrot.slane %v4264_v22, %v5016_v7  ;;  %3911 = vmatpush3.bf16.msra.mxu1 %v3910_v60  ;;  %v5331_v56 = vsel %vm1458_vm2, %v5169_v24, %v1835_v59  ;;  %v1837_v41 = vsel %vm1447_vm12, %v1825_v1, %v5236_v46 }
 0x1a7   :  { %v1467_v10 = vsel %vm1447_vm12, %v5317_v30, %v5292_v39  ;;  %3575 = vmatprep.subr.mxu1 %v4343_v6  ;;  %v1838_v53 = vsel %vm1449_vm13, %v5205_v29, %v1837_v41  ;;  %v1962_v2 = vsel %vm1449_vm13, %v5142_v49, %v1961_v38  ;;  %v1956_v62 = vrot.slane %v4266_v33, %v5016_v7  ;;  %v3072_v41 = vld [vmem:[%s5932_s3 + $0xf0] sm:$0xff]  ;;  %v3081_v38 = vld [vmem:[%s5932_s3 + $0x118] sm:$0xff] }
 0x1a8   :  { %v1468_v60 = vsel %vm1449_vm13, %v5324_v54, %v1467_v10  ;;  %v1713_v48 = vsel %vm1447_vm12, %v5324_v54, %v5317_v30  ;;  %v1839_v37 = vsel %vm1451_vm14, %v5262_v9, %v1838_v53  ;;  %v1963_v8 = vsel %vm1451_vm14, %v5152_v28, %v1962_v2  ;;  %v3070_v10 = vld [vmem:[%s5932_s3 + $0xe0] sm:$0xff]  ;;  %v3073_v53 = vld [vmem:[%s5932_s3 + $0xf8] sm:$0xff]  ;;  %v3084_v2 = vld [vmem:[%s5932_s3 + $0x130] sm:$0xff] }
 0x1a9   :  { %v4268_v4 = vpop.eup %4267  ;;  %v1840_v29 = vsel %vm543_vm6, %v5269_v18, %v1839_v37  ;;  %v1964_v19 = vsel %vm543_vm6, %v5156_v25, %v1963_v8  ;;  %v1968_v28 = vsel %vm1447_vm12, %v1956_v62, %v1825_v1  ;;  %v3913_v50 = vpack.c.bf16 %v3065_v23, %v3064_v47  ;;  %v3085_v62 = vld [vmem:[%s5932_s3 + $0x138] sm:$0xff]  ;;  %v3086_v47 = vld [vmem:[%s5932_s3 + $0x140] sm:$0xff] }
 0x1aa   :  { %v4270_v15 = vpop.eup %4269  ;;  %v1446_v20 = vrot.slane %v4268_v4, %v5016_v7  ;;  %3576 = vmatpush3.msk.msra.mxu1 %vm1477_vm11, %v1334_v27  ;;  %v1841_v31 = vsel %vm1454_vm15, %v5278_v52, %v1840_v29  ;;  %v1965_v42 = vsel %vm1454_vm15, %v5145_v58, %v1964_v19  ;;  %v1969_v25 = vsel %vm1449_vm13, %v5262_v9, %v1968_v28  ;;  %v3083_v29 = vld [vmem:[%s5932_s3 + $0x128] sm:$0xff]  ;;  %v3096_v19 = vld [vmem:[%s5932_s3 + $0x170] sm:$0xff]  ;;  %v3097_v28 = vld [vmem:[%s5932_s3 + $0x178] sm:$0xff] }
 0x1ab   :  { %3912 = vmatprep.subr.bf16.mxu1 %v4341_v3  ;;  %v1842_v5 = vsel %vm1456_vm1, %v5292_v39, %v1841_v31  ;;  %v1829_v12 = vrot.slane %v4270_v15, %v5016_v7  ;;  %v1966_v14 = vsel %vm1456_vm1, %v5169_v24, %v1965_v42  ;;  %v1970_v44 = vsel %vm1451_vm14, %v5269_v18, %v1969_v25  ;;  %v3082_v15 = vld [vmem:[%s5932_s3 + $0x120] sm:$0xff]  ;;  %v3088_v31 = vld [vmem:[%s5932_s3 + $0x150] sm:$0xff]  ;;  %v3101_v25 = vld [vmem:[%s5932_s3 + $0x198] sm:$0xff] }
 0x1ac   :  { %v1469_v49 = vsel %vm1451_vm14, %v1446_v20, %v1468_v60  ;;  %v1714_v26 = vsel %vm1449_vm13, %v1446_v20, %v1713_v48  ;;  %v1844_v34 = vsel %vm1447_vm12, %v1446_v20, %v5324_v54  ;;  %v5381_v16 = vsel %vm1458_vm2, %v5317_v30, %v1842_v5  ;;  %v3080_v60 = vld [vmem:[%s5932_s3 + $0x110] sm:$0xff]  ;;  %v3074_v48 = vld [vmem:[%s5932_s3 + $0x100] sm:$0xf]  ;;  %v3089_v5 = vld [vmem:[%s5932_s3 + $0x158] sm:$0xf] }
 0x1ad   :  { %3553 = vmatmul.mubr.msk.f32.gmra.mrb[4].mxu1 %vm1470_vm3, %v1469_v49  ;;  %v5406_v40 = vsel %vm1458_vm2, %v5236_v46, %v1966_v14  ;;  %v1971_v58 = vsel %vm543_vm6, %v5278_v52, %v1970_v44  ;;  %v3916_v9 = vpack.c.bf16 %v3067_v0, %v3066_v61  ;;  %v1585_v24 = vsel %vm1447_vm12, %v5292_v39, %v5278_v52  ;;  %v3068_v52 = vld [vmem:[%s5932_s3 + $0xd0] sm:$0xff]  ;;  %v3094_v49 = vld [vmem:[%s5932_s3 + $0x160] sm:$0xff]  ;;  %v3099_v0 = vld [vmem:[%s5932_s3 + $0x188] sm:$0xff] }
 0x1ae   :  { %3577 = vmatprep.mubr.msk.f32.mxu1 %vm4342_vm0, %v4343_v6  ;;  %v1972_v18 = vsel %vm1454_vm15, %v5292_v39, %v1971_v58  ;;  %v3069_v39 = vld [vmem:[%s5932_s3 + $0xd8] sm:$0xff]  ;;  %v1586_v59 = vsel %vm1449_vm13, %v5317_v30, %v1585_v24  ;;  %v3925_v4 = vpack.c.bf16 %v3073_v53, %v3072_v41  ;;  %v3937_v23 = vpack.c.bf16 %v3086_v47, %v3085_v62  ;;  %v3098_v61 = vld [vmem:[%s5932_s3 + $0x180] sm:$0xff]  ;;  %v3100_v42 = vld [vmem:[%s5932_s3 + $0x190] sm:$0xff] }
 0x1af   :  { %v4272_v55 = vpop.eup %4271  ;;  %v3919_v33 = vpack.c.bf16 %v3069_v39, %v3068_v52  ;;  %v3104_v44 = vld [vmem:[%s5932_s3 + $0x1b0] sm:$0xf]  ;;  %v3125_v39 = vld [vmem:[%s5934_s5 + $0x78] sm:$0xff]  ;;  %vm2942_vm6 = vcmask 74752  }
 0x1b0   :  { %v4274_v13 = vpop.eup %4273  ;;  %v1698_v63 = vrot.slane %v4272_v55, %v5016_v7  ;;  %v3102_v55 = vld [vmem:[%s5932_s3 + $0x1a0] sm:$0xff]  ;;  %v3124_v52 = vld [vmem:[%s5934_s5 + $0x70] sm:$0xff]  ;;  %v3129_v53 = vld [vmem:[%s5934_s5 + $0x98] sm:$0xff] }
 0x1b1   :  { %3578 = vmatmul.mubr.msk.f32.vlgmr.msra.gmra.mrb[0].mxu1 %vm1470_vm3, %v5224_v36  ;;  %v1960_v32 = vrot.slane %v4274_v13, %v5016_v7  ;;  %v1973_v36 = vsel %vm1456_vm1, %v5317_v30, %v1972_v18  ;;  %v1587_v30 = vsel %vm1451_vm14, %v5324_v54, %v1586_v59  ;;  %v3120_v13 = vld [vmem:[%s5934_s5 + $0x50] sm:$0xff]  ;;  %v3122_v18 = vld [vmem:[%s5934_s5 + $0x60] sm:$0xff] }
 0x1b2   :  { %3914 = vmatpush3.bf16.msra.mxu1 %v3913_v50  ;;  %3580 = vmatprep.mubr.msk.f32.mxu1 %vm4342_vm0, %v4343_v6  ;;  %v1715_v46 = vsel %vm1451_vm14, %v1698_v63, %v1714_v26  ;;  %v1845_v51 = vsel %vm1449_vm13, %v1698_v63, %v1844_v34  ;;  %v5436_v57 = vsel %vm1458_vm2, %v5324_v54, %v1973_v36  ;;  %v3079_v54 = vld [vmem:[%s5932_s3 + $0x108] sm:$0xff]  ;;  %v2263_v36 = vld [vmem:[%s5934_s5 + $0x18] sm:$0xff]  ;;  %v3128_v41 = vld [vmem:[%s5934_s5 + $0x90] sm:$0xff] }
 0x1b3   :  { %3915 = vmatprep.subr.bf16.mxu1 %v4341_v3  ;;  %v5432_v21 = vsel %vm1451_vm14, %v1829_v12, %v1845_v51  ;;  %v1975_v45 = vsel %vm1447_vm12, %v1698_v63, %v1446_v20  ;;  %v3928_v37 = vpack.c.bf16 %v3080_v60, %v3079_v54  ;;  %v3931_v20 = vpack.c.bf16 %v3082_v15, %v3081_v38  ;;  %v3095_v26 = vld [vmem:[%s5932_s3 + $0x168] sm:$0xff]  ;;  %v3121_v63 = vld [vmem:[%s5934_s5 + $0x58] sm:$0xff] }
 0x1b4   :  { %v1976_v22 = vsel %vm1449_vm13, %v1829_v12, %v1975_v45  ;;  %v3943_v34 = vpack.c.bf16 %v3095_v26, %v3094_v49  ;;  %v3946_v50 = vpack.c.bf16 %v3097_v28, %v3096_v19  ;;  %v3103_v12 = vld [vmem:[%s5932_s3 + $0x1a8] sm:$0xff]  ;;  %v3958_v58 = vpack.c.bf16 %v3121_v63, %v3120_v13 }
 0x1b5   :  { %3581 = vmatmul.mubr.msk.f32.gmra.mrb[2].mxu1 %vm1470_vm3, %v5296_v43  ;;  %v5445_v1 = vsel %vm1451_vm14, %v1960_v32, %v1976_v22  ;;  %v3071_v43 = vld [vmem:[%s5932_s3 + $0xe8] sm:$0xff]  ;;  %v3955_v14 = vpack.c.bf16 %v3103_v12, %v3102_v55  ;;  %v3964_v22 = vpack.c.bf16 %v3125_v39, %v3124_v52  ;;  %v3970_v60 = vpack.c.bf16 %v3129_v53, %v3128_v41 }
 0x1b6   :  { %3917 = vmatpush3.bf16.msra.mxu1 %v3916_v9  ;;  %3583 = vmatprep.mubr.msk.f32.mxu1 %vm4342_vm0, %v4343_v6  ;;  %v3922_v27 = vpack.c.bf16 %v3071_v43, %v3070_v10  ;;  %v2261_v9 = vld [vmem:[%s5934_s5 + $0x8] sm:$0xff]  ;;  %v2266_v10 = vld [vmem:[%s5934_s5 + $0x30] sm:$0xff]  ;;  %v2267_v43 = vld [vmem:[%s5934_s5 + $0x38] sm:$0xff] }
 0x1b7   :  { %3918 = vmatprep.subr.bf16.mxu1 %v4341_v3  ;;  %v3123_v32 = vld [vmem:[%s5934_s5 + $0x68] sm:$0xff] }
 0x1b8   :  { %v3961_v51 = vpack.c.bf16 %v3123_v32, %v3122_v18  ;;  %v2265_v45 = vld [vmem:[%s5934_s5 + $0x28] sm:$0xff] }
 0x1b9   :  { %3584 = vmatmul.mubr.msk.f32.gmra.mrb[4].mxu1 %vm1470_vm3, %v1587_v30  ;;  %v2269_v54 = vld [vmem:[%s5934_s5 + $0x48] sm:$0xff] }
 0x1ba   :  { %3920 = vmatpush3.bf16.msra.mxu1 %v3919_v33  ;;  %3608 = vmatprep.mubr.msk.f32.mxu1 %vm4342_vm0, %v4343_v6  ;;  %v3127_v33 = vld [vmem:[%s5934_s5 + $0x88] sm:$0xff] }
 0x1bb   :  { %3921 = vmatprep.subr.bf16.mxu1 %v4341_v3 }
 0x1be   :  { %3923 = vmatpush3.bf16.msra.mxu1 %v3922_v27  ;;  %v3982_v27 = vpack.c.bf16 %v2267_v43, %v2266_v10 }
 0x1bf   :  { %3924 = vmatprep.subr.bf16.mxu1 %v4341_v3 }
 0x1c2   :  { %3926 = vmatpush3.bf16.msra.mxu1 %v3925_v4  ;;  %v2268_v4 = vld [vmem:[%s5934_s5 + $0x40] sm:$0xff] }
 0x1c3   :  { %3606 = vmatprep.subr.mxu1 %v4343_v6 }
 0x1c6   :  { %3607 = vmatpush3.msk.msra.mxu1 %vm1477_vm11, %v3074_v48  ;;  %v3985_v48 = vpack.c.bf16 %v2269_v54, %v2268_v4 }
 0x1c7   :  { %3609 = vmatmul.mubr.msk.f32.vlgmr.msra.gmra.mrb[0].mxu1 %vm1470_vm3, %v5273_v35  ;;  %3927 = vmatprep.subr.bf16.mxu1 %v4341_v3  ;;  %v3934_v35 = vpack.c.bf16 %v3084_v2, %v3083_v29 }
 0x1c8   :  { %3929 = vmatpush3.bf16.msra.mxu1 %v3928_v37  ;;  %3611 = vmatprep.mubr.msk.f32.mxu1 %vm4342_vm0, %v4343_v6  ;;  %v3119_v37 = vld [vmem:[%s5933_s4] ss:$0 sm:$0xff] }
 0x1c9   :  { %3930 = vmatprep.subr.bf16.mxu1 %v4341_v3  ;;  %v2171_v38 = vcombine.high %v3119_v37, %v3119_v37  ;;  %v5664_v15 = vrot.slane %v3119_v37, %v4962_v11 }
 0x1cb   :  { %3612 = vmatmul.mubr.msk.f32.gmra.mrb[2].mxu1 %vm1470_vm3, %v5310_v17  ;;  %v3087_v17 = vld [vmem:[%s5932_s3 + $0x148] sm:$0xff]  ;;  %v2185_v29 = vrot.slane %v2171_v38, %v4962_v11  ;;  %v2186_v47 = vcombine.high %v5664_v15, %v5664_v15 }
 0x1cc   :  { %3932 = vmatpush3.bf16.msra.mxu1 %v3931_v20  ;;  %3614 = vmatprep.mubr.msk.f32.mxu1 %vm4342_vm0, %v4343_v6  ;;  %v3940_v8 = vpack.c.bf16 %v3088_v31, %v3087_v17 }
 0x1cd   :  { %3933 = vmatprep.subr.bf16.mxu1 %v4341_v3  ;;  %v2187_v26 = vcombine.high %v2185_v29, %v2185_v29 }
 0x1cf   :  { %3615 = vmatmul.mubr.msk.f32.gmra.mrb[4].mxu1 %vm1470_vm3, %v1715_v46  ;;  %v2262_v46 = vld [vmem:[%s5934_s5 + $0x10] sm:$0xff]  ;;  %v2191_v63 = vrot.slane %v2187_v26, 1 }
 0x1d0   :  { %3935 = vmatpush3.bf16.msra.mxu1 %v3934_v35  ;;  %3639 = vmatprep.mubr.msk.f32.mxu1 %vm4342_vm0, %v4343_v6 }
 0x1d1   :  { %3936 = vmatprep.subr.bf16.mxu1 %v4341_v3 }
 0x1d4   :  { %3938 = vmatpush3.bf16.msra.mxu1 %v3937_v23 }
 0x1d5   :  { %3939 = vmatprep.subr.bf16.mxu1 %v4341_v3 }
 0x1d8   :  { %3941 = vmatpush3.bf16.msra.mxu1 %v3940_v8  ;;  %v2188_v8 = vrot.slane %v5664_v15, 1 }
 0x1d9   :  { %3637 = vmatprep.subr.mxu1 %v4343_v6 }
 0x1dc   :  { %3638 = vmatpush3.msk.msra.mxu1 %vm1477_vm11, %v3089_v5 }
 0x1dd   :  { %3640 = vmatmul.mubr.msk.f32.vlgmr.msra.gmra.mrb[0].mxu1 %vm1470_vm3, %v5331_v56  ;;  %3942 = vmatprep.subr.bf16.mxu1 %v4341_v3  ;;  %v3949_v56 = vpack.c.bf16 %v3099_v0, %v3098_v61  ;;  %v2189_v61 = vrot.slane %v2186_v47, 1 }
 0x1de   :  { %3944 = vmatpush3.bf16.msra.mxu1 %v3943_v34  ;;  %3642 = vmatprep.mubr.msk.f32.mxu1 %vm4342_vm0, %v4343_v6 }
 0x1df   :  { %3945 = vmatprep.subr.bf16.mxu1 %v4341_v3 }
 0x1e1   :  { %3643 = vmatmul.mubr.msk.f32.gmra.mrb[2].mxu1 %vm1470_vm3, %v5381_v16  ;;  %v3952_v16 = vpack.c.bf16 %v3101_v25, %v3100_v42  ;;  %v2190_v42 = vrot.slane %v2185_v29, 1 }
 0x1e2   :  { %3947 = vmatpush3.bf16.msra.mxu1 %v3946_v50  ;;  %3645 = vmatprep.mubr.msk.f32.mxu1 %vm4342_vm0, %v4343_v6 }
 0x1e3   :  { %3948 = vmatprep.subr.bf16.mxu1 %v4341_v3 }
 0x1e5   :  { %3646 = vmatmul.mubr.msk.f32.gmra.mrb[4].mxu1 %vm1470_vm3, %v5432_v21  ;;  %v3976_v21 = vpack.c.bf16 %v2263_v36, %v2262_v46 }
 0x1e6   :  { %3950 = vmatpush3.bf16.msra.mxu1 %v3949_v56  ;;  %3670 = vmatprep.mubr.msk.f32.mxu1 %vm4342_vm0, %v4343_v6 }
 0x1e7   :  { %3951 = vmatprep.subr.bf16.mxu1 %v4341_v3 }
 0x1ea   :  { %3953 = vmatpush3.bf16.msra.mxu1 %v3952_v16 }
 0x1eb   :  { %3954 = vmatprep.subr.bf16.mxu1 %v4341_v3 }
 0x1ee   :  { %3956 = vmatpush3.bf16.msra.mxu1 %v3955_v14 }
 0x1ef   :  { %3668 = vmatprep.subr.mxu1 %v4343_v6 }
 0x1f2   :  { %3669 = vmatpush3.msk.msra.mxu1 %vm1477_vm11, %v3104_v44 }
 0x1f3   :  { %3671 = vmatmul.mubr.msk.f32.vlgmr.msra.gmra.mrb[0].mxu1 %vm1470_vm3, %v5406_v40  ;;  %3957 = vmatprep.subr.bf16.mxu1 %v4341_v3  ;;  %v2260_v40 = vld [vmem:[%s5934_s5] sm:$0xff] }
 0x1f4   :  { %3673 = vmatprep.mubr.msk.f32.mxu1 %vm4342_vm0, %v4343_v6  ;;  %v3973_v24 = vpack.c.bf16 %v2261_v9, %v2260_v40  ;;  %3959 = vmatpush3.bf16.msra.mxu1 %v3958_v58 }
 0x1f5   :  { %3960 = vmatprep.subr.bf16.mxu1 %v4341_v3 }
 0x1f6   :  { %3974 = vmatpush3.bf16.msra.mxu0 %v3973_v24 }
 0x1f7   :  { %3674 = vmatmul.mubr.msk.f32.gmra.mrb[2].mxu1 %vm1470_vm3, %v5436_v57  ;;  %3975 = vmatprep.subr.bf16.mxu0 %v4341_v3  ;;  %v2264_v57 = vld [vmem:[%s5934_s5 + $0x20] sm:$0xff] }
 0x1f8   :  { %3676 = vmatprep.mubr.msk.f32.mxu1 %vm4342_vm0, %v4343_v6  ;;  %3962 = vmatpush3.bf16.msra.mxu1 %v3961_v51  ;;  %v3979_v59 = vpack.c.bf16 %v2265_v45, %v2264_v57 }
 0x1f9   :  { %3963 = vmatprep.subr.bf16.mxu1 %v4341_v3 }
 0x1fa   :  { %3977 = vmatpush3.bf16.msra.mxu0 %v3976_v21 }
 0x1fb   :  { %3677 = vmatmul.mubr.msk.f32.gmra.mrb[4].mxu1 %vm1470_vm3, %v5445_v1  ;;  %v3126_v1 = vld [vmem:[%s5934_s5 + $0x80] sm:$0xff]  ;;  %3978 = vmatprep.subr.bf16.mxu0 %v4341_v3 }
 0x1fc   :  { %3699 = vmatprep.mubr.msk.f32.mxu1 %vm4342_vm0, %v4343_v6  ;;  %3965 = vmatpush3.bf16.msra.mxu1 %v3964_v22  ;;  %v3967_v30 = vpack.c.bf16 %v3127_v33, %v3126_v1 }
 0x1fd   :  { %3966 = vmatprep.subr.bf16.mxu1 %v4341_v3 }
 0x1fe   :  { %3980 = vmatpush3.bf16.msra.mxu0 %v3979_v59 }
 0x1ff   :  { %3981 = vmatprep.subr.bf16.mxu0 %v4341_v3 }
 0x200   :  { %3968 = vmatpush3.bf16.msra.mxu1 %v3967_v30 }
 0x201   :  { %3969 = vmatprep.subr.bf16.mxu1 %v4341_v3 }
 0x202   :  { %3983 = vmatpush3.bf16.msra.mxu0 %v3982_v27 }
 0x203   :  { %3984 = vmatprep.subr.bf16.mxu0 %v4341_v3 }
 0x204   :  { %3971 = vmatpush3.bf16.msra.mxu1 %v3970_v60 }
 0x205   :  { %3987 = vmatprep.subr.bf16.mxu1 %v4341_v3 }
 0x206   :  { %3986 = vmatpush3.bf16.msra.mxu0 %v3985_v48 }
 0x207   :  { %4002 = vmatprep.subr.bf16.mxu0 %v4341_v3 }
 0x2c6   :  { %v2053_v20 = vpop.f32.mrb[0].mxu1 }
 0x2c7   :  { %v2073_v2 = vcombine.high %v2053_v20, %v2053_v20  ;;  %v2080_v35 = vrot.slane %v2053_v20, %v4962_v11  ;;  %v3672_v62 = vpop.f32.mrb[1].mxu1 }
 0x2c9   :  { %v2087_v23 = vrot.slane %v2073_v2, %v4962_v11  ;;  %v2088_v17 = vcombine.high %v2080_v35, %v2080_v35  ;;  %v3109_v31 = vrot.slane %v2080_v35, 9 }
 0x2ca   :  { %v2058_v49 = vpop.f32.mrb[2].mxu1 }
 0x2cb   :  { %v2089_v5 = vcombine.high %v2087_v23, %v2087_v23  ;;  %v3110_v34 = vrot.slane %v2088_v17, 9  ;;  %v3111_v19 = vrot.slane %v2087_v23, 9  ;;  %v2155_v28 = vadd.f32 %v3109_v31, %v2080_v35  ;;  %v3675_v50 = vpop.f32.mrb[3].mxu1 }
 0x2cc   :  { %v2090_v0 = vcombine.high %v2058_v49, %v2058_v49  ;;  %v2097_v56 = vrot.slane %v2058_v49, %v4962_v11 }
 0x2cd   :  { %v3112_v25 = vrot.slane %v2089_v5, 9  ;;  %v2156_v16 = vadd.f32 %v3110_v34, %v2088_v17  ;;  %v2157_v55 = vadd.f32 %v3111_v19, %v2087_v23  ;;  %v2200_v12 = vadd.f32 %v5664_v15, %v2155_v28 }
 0x2ce   :  { %v2104_v14 = vrot.slane %v2090_v0, %v4962_v11  ;;  %v2105_v44 = vcombine.high %v2097_v56, %v2097_v56  ;;  %v3113_v13 = vrot.slane %v2097_v56, 9  ;;  %v2063_v40 = vpop.f32.mrb[4].mxu1 }
 0x2cf   :  { %v2158_v58 = vadd.f32 %v3112_v25, %v2089_v5  ;;  %v2201_v9 = vadd.f32 %v2188_v8, %v2156_v16  ;;  %v2202_v24 = vadd.f32 %v2186_v47, %v2157_v55  ;;  %v2210_v18 = vsub.f32 0.0, %v2200_v12  ;;  %v3678_v32 = vpop.f32.mrb[5].mxu1 }
 0x2d0   :  { %v2106_v46 = vcombine.high %v2104_v14, %v2104_v14  ;;  %v3114_v51 = vrot.slane %v2105_v44, 9  ;;  %v3115_v36 = vrot.slane %v2104_v14, 9  ;;  %v2159_v52 = vadd.f32 %v3113_v13, %v2097_v56 }
 0x2d1   :  { %v2203_v39 = vadd.f32 %v2189_v61, %v2158_v58  ;;  %v2211_v21 = vsub.f32 0.0, %v2201_v9  ;;  %v2212_v57 = vsub.f32 0.0, %v2202_v24  ;;  %v2220_v45 = vmul.f32 1.442695, %v2210_v18 }
 0x2d2   :  { %v3116_v22 = vrot.slane %v2106_v46, 9  ;;  %v2160_v59 = vadd.f32 %v3114_v51, %v2105_v44  ;;  %v2161_v1 = vadd.f32 %v3115_v36, %v2104_v14  ;;  %v2204_v33 = vadd.f32 %v2185_v29, %v2159_v52  ;;  %v3144_v51 = vld [vmem:[%s5934_s5 + $0xf8] sm:$0xff] }
 0x2d3   :  { %v2213_v10 = vsub.f32 0.0, %v2203_v39  ;;  %4275 = vpow2.f32 %v2220_v45  ;;  %v2222_v43 = vmul.f32 1.442695, %v2211_v21  ;;  %v2224_v30 = vmul.f32 1.442695, %v2212_v57  ;;  %v3132_v39 = vld [vmem:[%s5934_s5 + $0xa0] sm:$0xff] }
 0x2d4   :  { %v2162_v27 = vadd.f32 %v3116_v22, %v2106_v46  ;;  %v2205_v41 = vadd.f32 %v2190_v42, %v2160_v59  ;;  %v2206_v53 = vadd.f32 %v2187_v26, %v2161_v1  ;;  %v2113_v54 = vrot.slane %v2063_v40, %v4962_v11  ;;  %v3143_v46 = vld [vmem:[%s5934_s5 + $0xf0] sm:$0xff]  ;;  %v3133_v21 = vld [vmem:[%s5934_s5 + $0xa8] sm:$0xff] }
 0x2d5   :  { %4277 = vpow2.f32 %v2222_v43  ;;  %v2226_v4 = vmul.f32 1.442695, %v2213_v10  ;;  %v2214_v38 = vsub.f32 0.0, %v2204_v33  ;;  %v4003_v1 = vpack.c.bf16 %v3144_v51, %v3143_v46  ;;  %v3160_v51 = vld [vmem:[%s5934_s5 + $0x170] sm:$0xff] }
 0x2d6   :  { %4279 = vpow2.f32 %v2224_v30  ;;  %v2207_v60 = vadd.f32 %v2191_v63, %v2162_v27  ;;  %v2215_v48 = vsub.f32 0.0, %v2205_v41  ;;  %v2216_v37 = vsub.f32 0.0, %v2206_v53  ;;  %v3145_v27 = vld [vmem:[%s5934_s5 + $0x100] sm:$0xff]  ;;  %v3146_v41 = vld [vmem:[%s5934_s5 + $0x108] sm:$0xff] }
 0x2d7   :  { %v2114_v20 = vcombine.high %v2113_v54, %v2113_v54  ;;  %v3117_v2 = vrot.slane %v2113_v54, 9  ;;  %4281 = vpow2.f32 %v2226_v4  ;;  %v2228_v31 = vmul.f32 1.442695, %v2214_v38  ;;  %v3134_v4 = vld [vmem:[%s5934_s5 + $0xb0] sm:$0xff] }
 0x2d8   :  { %v2217_v35 = vsub.f32 0.0, %v2207_v60  ;;  %v2230_v29 = vmul.f32 1.442695, %v2215_v48  ;;  %v2232_v62 = vmul.f32 1.442695, %v2216_v37  ;;  %v3988_v30 = vpack.c.bf16 %v3133_v21, %v3132_v39  ;;  %v3162_v39 = vld [vmem:[%s5934_s5 + $0x180] sm:$0xff] }
 0x2d9   :  { %v3118_v47 = vrot.slane %v2114_v20, 9  ;;  %v2163_v23 = vadd.f32 %v3117_v2, %v2113_v54  ;;  %v3135_v54 = vld [vmem:[%s5934_s5 + $0xb8] sm:$0xff]  ;;  %v3163_v21 = vld [vmem:[%s5934_s5 + $0x188] sm:$0xff] }
 0x2da   :  { %4283 = vpow2.f32 %v2230_v29  ;;  %v2234_v17 = vmul.f32 1.442695, %v2217_v35  ;;  %v3991_v35 = vpack.c.bf16 %v3135_v54, %v3134_v4  ;;  %v3147_v29 = vld [vmem:[%s5934_s5 + $0x110] sm:$0xff]  ;;  %v2749_v54 = vld [vmem:[%s5936_s7 + $0x40] sm:$0xff] }
 0x2db   :  { %4285 = vpow2.f32 %v2232_v62  ;;  %v2164_v49 = vadd.f32 %v3118_v47, %v2114_v20  ;;  %v2208_v11 = vadd.f32 %v5664_v15, %v2163_v23  ;;  %v4006_v20 = vpack.c.bf16 %v3146_v41, %v3145_v27  ;;  %v3148_v62 = vld [vmem:[%s5934_s5 + $0x118] sm:$0xff]  ;;  %v3136_v23 = vld [vmem:[%s5934_s5 + $0xc0] sm:$0xff]  ;;  %v2747_v41 = vld [vmem:[%s5936_s7 + $0x30] sm:$0xff] }
 0x2dc   :  { %4287 = vpow2.f32 %v2234_v17  ;;  %v3137_v17 = vld [vmem:[%s5934_s5 + $0xc8] sm:$0xff] }
 0x2dd   :  { %v4276_v26 = vpop.eup %4275  ;;  %v2209_v5 = vadd.f32 %v2188_v8, %v2164_v49  ;;  %v2218_v34 = vsub.f32 0.0, %v2208_v11  ;;  %4289 = vpow2.f32 %v2228_v31 }
 0x2de   :  { %v2240_v28 = vadd.f32 1.0, %v4276_v26  ;;  %v4009_v26 = vpack.c.bf16 %v3148_v62, %v3147_v29  ;;  %v2845_v62 = vld [vmem:[%s5938_s9] sm:$0xff] }
 0x2df   :  { %v4278_v19 = vpop.eup %4277  ;;  %v2219_v50 = vsub.f32 0.0, %v2209_v5  ;;  %v2236_v61 = vmul.f32 1.442695, %v2218_v34  ;;  %v3994_v5 = vpack.c.bf16 %v3137_v17, %v3136_v23  ;;  %v3149_v34 = vld [vmem:[%s5934_s5 + $0x120] sm:$0xff]  ;;  %v2755_v17 = vld [vmem:[%s5936_s7 + $0x70] sm:$0xff] }
 0x2e0   :  { %v4280_v0 = vpop.eup %4279  ;;  %v2241_v56 = vadd.f32 1.0, %v4278_v19  ;;  %v3150_v19 = vld [vmem:[%s5934_s5 + $0x128] sm:$0xff] }
 0x2e1   :  { %4291 = vpow2.f32 %v2236_v61  ;;  %v2238_v42 = vmul.f32 1.442695, %v2219_v50  ;;  %v2242_v25 = vadd.f32 1.0, %v4280_v0  ;;  %v4282_v16 = vpop.eup %4281  ;;  %v3138_v61 = vld [vmem:[%s5934_s5 + $0xd0] sm:$0xff]  ;;  %v3139_v0 = vld [vmem:[%s5934_s5 + $0xd8] sm:$0xff] }
 0x2e2   :  { %4293 = vrcp.f32 %v2240_v28  ;;  %v2243_v13 = vadd.f32 1.0, %v4282_v16  ;;  %v3997_v16 = vpack.c.bf16 %v3139_v0, %v3138_v61 }
 0x2e3   :  { %4295 = vrcp.f32 %v2241_v56 }
 0x2e4   :  { %v4284_v55 = vpop.eup %4283  ;;  %4297 = vpow2.f32 %v2238_v42 }
 0x2e5   :  { %v4286_v12 = vpop.eup %4285  ;;  %v2245_v14 = vadd.f32 1.0, %v4284_v55  ;;  %4299 = vrcp.f32 %v2242_v25  ;;  %v4012_v25 = vpack.c.bf16 %v3150_v19, %v3149_v34  ;;  %v3151_v55 = vld [vmem:[%s5934_s5 + $0x130] sm:$0xff] }
 0x2e6   :  { %v4288_v15 = vpop.eup %4287  ;;  %v2246_v8 = vadd.f32 1.0, %v4286_v12  ;;  %v3152_v12 = vld [vmem:[%s5934_s5 + $0x138] sm:$0xff] }
 0x2e7   :  { %v2247_v44 = vadd.f32 1.0, %v4288_v15  ;;  %4301 = vrcp.f32 %v2245_v14  ;;  %v4290_v63 = vpop.eup %4289  ;;  %v3141_v15 = vld [vmem:[%s5934_s5 + $0xe8] sm:$0xff] }
 0x2e8   :  { %4303 = vrcp.f32 %v2246_v8  ;;  %v2244_v58 = vadd.f32 1.0, %v4290_v63  ;;  %v4015_v8 = vpack.c.bf16 %v3152_v12, %v3151_v55  ;;  %v3155_v63 = vld [vmem:[%s5934_s5 + $0x148] sm:$0xff]  ;;  %v2847_v12 = vld [vmem:[%s5938_s9 + $0x10] sm:$0xff] }
 0x2e9   :  { %4305 = vrcp.f32 %v2247_v44 }
 0x2ea   :  { %4307 = vrcp.f32 %v2243_v13  ;;  %v3154_v13 = vld [vmem:[%s5934_s5 + $0x140] sm:$0xff] }
 0x2eb   :  { %v4292_v40 = vpop.eup %4291 }
 0x2ec   :  { %v2248_v9 = vadd.f32 1.0, %v4292_v40  ;;  %v4294_v24 = vpop.eup %4293  ;;  %v4018_v40 = vpack.c.bf16 %v3155_v63, %v3154_v13  ;;  %v2851_v13 = vld [vmem:[%s5938_s9 + $0x30] sm:$0xff]  ;;  %v2852_v63 = vld [vmem:[%s5938_s9 + $0x38] sm:$0xff] }
 0x2ed   :  { %v4296_v18 = vpop.eup %4295  ;;  %v2370_v22 = vrot.slane %v4294_v24, %v5016_v7 }
 0x2ee   :  { %4309 = vrcp.f32 %v2248_v9  ;;  %v4298_v32 = vpop.eup %4297  ;;  %v2286_v10 = vrot.slane %v4296_v18, %v5016_v7  ;;  %v3157_v9 = vld [vmem:[%s5934_s5 + $0x158] sm:$0xff]  ;;  %v3158_v18 = vld [vmem:[%s5934_s5 + $0x160] sm:$0xff] }
 0x2ef   :  { %v4300_v36 = vpop.eup %4299  ;;  %4311 = vrcp.f32 %v2244_v58  ;;  %v2249_v52 = vadd.f32 1.0, %v4298_v32  ;;  %v3156_v58 = vld [vmem:[%s5934_s5 + $0x150] sm:$0xff]  ;;  %v3159_v32 = vld [vmem:[%s5934_s5 + $0x168] sm:$0xff] }
 0x2f0   :  { %v2464_v60 = vrot.slane %v4300_v36, %v5016_v7  ;;  %v4021_v24 = vpack.c.bf16 %v3157_v9, %v3156_v58  ;;  %v4024_v46 = vpack.c.bf16 %v3159_v32, %v3158_v18  ;;  %v3161_v36 = vld [vmem:[%s5934_s5 + $0x178] sm:$0xff]  ;;  %v2853_v58 = vld [vmem:[%s5938_s9 + $0x40] sm:$0xff]  ;;  %v2854_v9 = vld [vmem:[%s5938_s9 + $0x48] sm:$0xff] }
 0x2f1   :  { %v4302_v57 = vpop.eup %4301  ;;  %4313 = vrcp.f32 %v2249_v52  ;;  %v4027_v52 = vpack.c.bf16 %v3161_v36, %v3160_v51  ;;  %v2855_v18 = vld [vmem:[%s5938_s9 + $0x50] sm:$0xf]  ;;  %v3166_v32 = vld [vmem:[%s5937_s8] ss:$0 sm:$0xff]  ;;  %s4345_s8 = smov [#allocation2]  }
 0x2f2   :  { %v4304_v45 = vpop.eup %4303  ;;  %v2374_v59 = vrot.slane %v4302_v57, %v5016_v7  ;;  %v4030_v57 = vpack.c.bf16 %v3163_v21, %v3162_v39  ;;  %s2950_s25 = sshll.u32 %s4345_s8, 4  ;;  %s2951_s25 = int_to_ptr.vmem [resolvable:$true] %s2950_s25 }
 0x2f3   :  { %v4306_v33 = vpop.eup %4305  ;;  %v2290_v43 = vrot.slane %v4304_v45, %v5016_v7  ;;  %v2741_v45 = vld [vmem:[%s5936_s7] sm:$0xff]  ;;  %s4317_s26 = scalar_lea.vmem %s2951_s25, 32  ;;  %p4322_p1 = scmp.lt.s32.totalorder %s2951_s25, %s2951_s25 }
 0x2f4   :  { %v2375_v53 = vsel %vm1447_vm12, %v2374_v59, %v2370_v22  ;;  %v2468_v48 = vrot.slane %v4306_v33, %v5016_v7  ;;  %v4308_v38 = vpop.eup %4307  ;;  %v2742_v22 = vld [vmem:[%s5936_s7 + $0x8] sm:$0xff]  ;;  %v2744_v33 = vld [vmem:[%s5936_s7 + $0x18] sm:$0xff]  ;;  %p4318_p0 = scmp.ne.s32.totalorder %s2951_s25, %s4317_s26  ;;  %p4323_p2 = scmp.lt.s32.totalorder %s4317_s26, %s4317_s26 }
 0x2f5   :  { %v2291_v37 = vsel %vm1447_vm12, %v2290_v43, %v2286_v10  ;;  %3723 = vmatmul.mubr.msk.f32.vlgmr.msra.gmra.mrb[14].mxu0 %vm2292_vm4, %v2375_v53  ;;  %v2559_v31 = vrot.slane %v4308_v38, %v5016_v7  ;;  %v4033_v59 = vpack.c.bf16 %v2742_v22, %v2741_v45  ;;  %v2745_v10 = vld [vmem:[%s5936_s7 + $0x20] sm:$0xff]  ;;  %v2748_v53 = vld [vmem:[%s5936_s7 + $0x38] sm:$0xff] }
 0x2f6   :  { %3700 = vmatmul.mubr.msk.f32.vlgmr.msra.gmra.mrb[6].mxu1 %vm2292_vm4, %v2291_v37  ;;  %4004 = vmatpush3.bf16.msra.mxu0 %v4003_v1  ;;  %v2469_v2 = vsel %vm1447_vm12, %v2468_v48, %v2464_v60  ;;  %v2743_v1 = vld [vmem:[%s5936_s7 + $0x10] sm:$0xff]  ;;  %v4042_v4 = vpack.c.bf16 %v2748_v53, %v2747_v41  ;;  %v2750_v60 = vld [vmem:[%s5936_s7 + $0x48] sm:$0xff]  ;;  %v2752_v38 = vld [vmem:[%s5936_s7 + $0x58] sm:$0xff]  ;;  %p4324_p3 = por %p4323_p2, %p4322_p1 }
 0x2f7   :  { %3989 = vmatpush3.bf16.msra.mxu1 %v3988_v30  ;;  %4005 = vmatprep.subr.bf16.mxu0 %v4341_v3  ;;  %v4036_v43 = vpack.c.bf16 %v2744_v33, %v2743_v1  ;;  %v2746_v30 = vld [vmem:[%s5936_s7 + $0x28] sm:$0xff]  ;;  %v4045_v48 = vpack.c.bf16 %v2750_v60, %v2749_v54  ;;  %v2751_v37 = vld [vmem:[%s5936_s7 + $0x50] sm:$0xff]  ;;  %v3170_v1 = vld [vmem:[%s5939_s10] ss:$0 sm:$0xff] }
 0x2f8   :  { %v4310_v47 = vpop.eup %4309  ;;  %3990 = vmatprep.subr.bf16.mxu1 %v4341_v3  ;;  %3745 = vmatprep.mubr.msk.f32.mxu1 %vm4342_vm0, %v4343_v6  ;;  %v4039_v27 = vpack.c.bf16 %v2746_v30, %v2745_v10  ;;  %p4325_p4 = pnand %p4324_p3, %p4318_p0 }
 0x2f9   :  { %3768 = vmatprep.mubr.msk.f32.mxu0 %vm4342_vm0, %v4343_v6  ;;  %v2563_v49 = vrot.slane %v4310_v47, %v5016_v7  ;;  %v4312_v11 = vpop.eup %4311  ;;  %v2846_v47 = vld [vmem:[%s5938_s9 + $0x8] sm:$0xff] }
 0x2fa   :  { %4007 = vmatpush3.bf16.msra.mxu0 %v4006_v20  ;;  %v2654_v56 = vrot.slane %v4312_v11, %v5016_v7  ;;  %v4048_v20 = vpack.c.bf16 %v2752_v38, %v2751_v37  ;;  %v4054_v23 = vpack.c.bf16 %v2846_v47, %v2845_v62 }
 0x2fb   :  { %3992 = vmatpush3.bf16.msra.mxu1 %v3991_v35  ;;  %4008 = vmatprep.subr.bf16.mxu0 %v4341_v3  ;;  %v2564_v28 = vsel %vm1447_vm12, %v2563_v49, %v2559_v31  ;;  %v4314_v50 = vpop.eup %4313  ;;  %v2754_v35 = vld [vmem:[%s5936_s7 + $0x68] sm:$0xff] }
 0x2fc   :  { %3993 = vmatprep.subr.bf16.mxu1 %v4341_v3  ;;  %v2658_v42 = vrot.slane %v4314_v50, %v5016_v7  ;;  %v3140_v7 = vld [vmem:[%s5934_s5 + $0xe0] sm:$0xff] }
 0x2fd   :  { %v4000_v44 = vpack.c.bf16 %v3141_v15, %v3140_v7  ;;  %v2849_v15 = vld [vmem:[%s5938_s9 + $0x20] sm:$0xff] }
 0x2fe   :  { %4010 = vmatpush3.bf16.msra.mxu0 %v4009_v26  ;;  %v2659_v14 = vsel %vm1447_vm12, %v2658_v42, %v2654_v56  ;;  %v3165_v42 = vld [vmem:[%s5935_s6] ss:$0 sm:$0xff] }
 0x2ff   :  { %3995 = vmatpush3.bf16.msra.mxu1 %v3994_v5  ;;  %4011 = vmatprep.subr.bf16.mxu0 %v4341_v3 }
 0x300   :  { %3996 = vmatprep.subr.bf16.mxu1 %v4341_v3 }
 0x302   :  { %4013 = vmatpush3.bf16.msra.mxu0 %v4012_v25 }
 0x303   :  { %3998 = vmatpush3.bf16.msra.mxu1 %v3997_v16  ;;  %4014 = vmatprep.subr.bf16.mxu0 %v4341_v3 }
 0x304   :  { %3999 = vmatprep.subr.bf16.mxu1 %v4341_v3 }
 0x306   :  { %4016 = vmatpush3.bf16.msra.mxu0 %v4015_v8  ;;  %v2850_v8 = vld [vmem:[%s5938_s9 + $0x28] sm:$0xff] }
 0x307   :  { %4001 = vmatpush3.bf16.msra.mxu1 %v4000_v44  ;;  %4032 = vmatprep.subr.bf16.mxu0 %v4341_v3  ;;  %v4060_v44 = vpack.c.bf16 %v2850_v8, %v2849_v15 }
 0x308   :  { %4017 = vmatprep.subr.bf16.mxu1 %v4341_v3 }
 0x309   :  { %3769 = vmatmul.mubr.msk.f32.vlgmr.msra.gmra.mrb[16].mxu0 %vm2292_vm4, %v2564_v28 }
 0x30a   :  { %3746 = vmatmul.mubr.msk.f32.vlgmr.msra.gmra.mrb[8].mxu1 %vm2292_vm4, %v2469_v2  ;;  %3824 = vmatprep.mubr.msk.f32.mxu0 %vm4342_vm0, %v4343_v6  ;;  %v2753_v2 = vld [vmem:[%s5936_s7 + $0x60] sm:$0xff] }
 0x30b   :  { %4019 = vmatpush3.bf16.msra.mxu1 %v4018_v40  ;;  %3791 = vmatprep.mubr.msk.f32.mxu1 %vm4342_vm0, %v4343_v6  ;;  %v4051_v29 = vpack.c.bf16 %v2754_v35, %v2753_v2  ;;  %v4063_v40 = vpack.c.bf16 %v2852_v63, %v2851_v13 }
 0x30c   :  { %4020 = vmatprep.subr.bf16.mxu1 %v4341_v3  ;;  %4034 = vmatpush3.bf16.msra.mxu0 %v4033_v59 }
 0x30d   :  { %4035 = vmatprep.subr.bf16.mxu0 %v4341_v3 }
 0x30f   :  { %4022 = vmatpush3.bf16.msra.mxu1 %v4021_v24  ;;  %v4066_v24 = vpack.c.bf16 %v2854_v9, %v2853_v58 }
 0x310   :  { %4023 = vmatprep.subr.bf16.mxu1 %v4341_v3  ;;  %4037 = vmatpush3.bf16.msra.mxu0 %v4036_v43 }
 0x311   :  { %4038 = vmatprep.subr.bf16.mxu0 %v4341_v3 }
 0x313   :  { %4025 = vmatpush3.bf16.msra.mxu1 %v4024_v46 }
 0x314   :  { %4026 = vmatprep.subr.bf16.mxu1 %v4341_v3  ;;  %4040 = vmatpush3.bf16.msra.mxu0 %v4039_v27 }
 0x315   :  { %4041 = vmatprep.subr.bf16.mxu0 %v4341_v3 }
 0x317   :  { %4028 = vmatpush3.bf16.msra.mxu1 %v4027_v52 }
 0x318   :  { %4029 = vmatprep.subr.bf16.mxu1 %v4341_v3  ;;  %4043 = vmatpush3.bf16.msra.mxu0 %v4042_v4 }
 0x319   :  { %4044 = vmatprep.subr.bf16.mxu0 %v4341_v3 }
 0x31b   :  { %4031 = vmatpush3.bf16.msra.mxu1 %v4030_v57 }
 0x31c   :  { %4053 = vmatprep.subr.bf16.mxu1 %v4341_v3  ;;  %4046 = vmatpush3.bf16.msra.mxu0 %v4045_v48 }
 0x31d   :  { %4047 = vmatprep.subr.bf16.mxu0 %v4341_v3 }
 0x31e   :  { %3792 = vmatmul.mubr.msk.f32.vlgmr.msra.gmra.mrb[10].mxu1 %vm2292_vm4, %v2659_v14  ;;  %v2848_v14 = vld [vmem:[%s5938_s9 + $0x18] sm:$0xff] }
 0x31f   :  { %3849 = vmatprep.mubr.msk.f32.mxu1 %vm4342_vm0, %v4343_v6  ;;  %4055 = vmatpush3.bf16.msra.mxu1 %v4054_v23  ;;  %vm2763_vm0 = vcmask 982016   ;;  %v4057_v7 = vpack.c.bf16 %v2848_v14, %v2847_v12 }
 0x320   :  { %4049 = vmatpush3.bf16.msra.mxu0 %v4048_v20  ;;  %4056 = vmatprep.subr.bf16.mxu1 %v4341_v3 }
 0x321   :  { %4050 = vmatprep.subr.bf16.mxu0 %v4341_v3 }
 0x323   :  { %4058 = vmatpush3.bf16.msra.mxu1 %v4057_v7 }
 0x324   :  { %4052 = vmatpush3.bf16.msra.mxu0 %v4051_v29  ;;  %4059 = vmatprep.subr.bf16.mxu1 %v4341_v3 }
 0x325   :  { %3822 = vmatprep.subr.mxu0 %v4343_v6 }
 0x327   :  { %4061 = vmatpush3.bf16.msra.mxu1 %v4060_v44 }
 0x328   :  { %3823 = vmatpush3.msra.mxu0 %v2755_v17  ;;  %4062 = vmatprep.subr.bf16.mxu1 %v4341_v3 }
 0x32b   :  { %4064 = vmatpush3.bf16.msra.mxu1 %v4063_v40 }
 0x32c   :  { %4065 = vmatprep.subr.bf16.mxu1 %v4341_v3 }
 0x32f   :  { %4067 = vmatpush3.bf16.msra.mxu1 %v4066_v24 }
 0x330   :  { %3847 = vmatprep.subr.mxu1 %v4343_v6 }
 0x333   :  { %3848 = vmatpush3.msk.msra.mxu1 %vm1477_vm11, %v2855_v18 }
 0x3c8   :  { %v2444_v31 = vpop.f32.mrb[14].mxu0 }
 0x3c9   :  { %v2361_v49 = vpop.f32.mrb[6].mxu1  ;;  %v3724_v11 = vpop.f32.mrb[15].mxu0 }
 0x3ca   :  { %v2445_v26 = vadd.f32 %v2444_v31, %v2361_v49  ;;  %v3701_v5 = vpop.f32.mrb[7].mxu1 }
 0x3dc   :  { %v2633_v34 = vpop.f32.mrb[16].mxu0 }
 0x3dd   :  { %v2538_v19 = vpop.f32.mrb[8].mxu1  ;;  %v3770_v28 = vpop.f32.mrb[17].mxu0 }
 0x3de   :  { %v2542_v50 = vadd.f32 %v2538_v19, %v2445_v26  ;;  %v3747_v61 = vpop.f32.mrb[9].mxu1 }
 0x3e0   :  { %v2637_v0 = vadd.f32 %v2633_v34, %v2542_v50 }
 0x3f1   :  { %v2728_v56 = vpop.f32.mrb[10].mxu1 }
 0x3f2   :  { %v2732_v25 = vadd.f32 %v2728_v56, %v2637_v0  ;;  %v3793_v16 = vpop.f32.mrb[11].mxu1 }
 0x3f4   :  { %v2740_v55 = vadd.f32 %v3165_v42, %v2732_v25 }
 0x3f6   :  { %3825 = vmatmul.mubr.msk.f32.vlgmr.msra.gmra.mrb[18].mxu0 %vm2763_vm0, %v2740_v55 }
 0x4c9   :  { %v2833_v46 = vpop.f32.mrb[18].mxu0 }
 0x4ca   :  { %v2834_v51 = vadd.f32 %v3166_v32, %v2833_v46  ;;  %v3826_v36 = vpop.f32.mrb[19].mxu0 }
 0x4cc   :  { %v2837_v52 = vmul.f32 0.6666667, %v2834_v51 }
 0x4ce   :  { %4315 = vtanh.f32 %v2837_v52 }
 0x4d8   :  { %v4316_v39 = vpop.eup %4315 }
 0x4d9   :  { %v2839_v3 = vmul.f32 1.7159, %v4316_v39 }
 0x4db   :  { %3850 = vmatmul.mubr.msk.f32.vlgmr.msra.gmra.mrb[12].mxu1 %vm1470_vm3, %v2839_v3  ;;  %v2840_v6 = vmul.f32 %v2839_v3, %v2839_v3 }
 0x4dd   :  { %v2842_v21 = vsel %vm2841_vm5, %v2840_v6, 0.0 }
 0x4de   :  { %2843 = vadd.xlane.f32.xlu0 %v2842_v21 }
 0x56b   :  { %v2844_v59 = vpop.xlane.xlu0 %2843 }
 0x5ae   :  { %v2928_v57 = vpop.f32.mrb[12].mxu1 }
 0x5af   :  { %v2932_v45 = vmul.f32 2.0, %v2928_v57  ;;  %v3851_v22 = vpop.f32.mrb[13].mxu1 }
 0x5b1   :  { %v2933_v33 = vsub.f32 %v2844_v59, %v2932_v45 }
 0x5b3   :  { %v2941_v10 = vadd.f32 %v3170_v1, %v2933_v33 }
 0x5b5   :  { %2943 = vst.msk [vmem:[#allocation2] sm:$0x3] %vm2942_vm6, %v2941_v10 }
 0x5b6   :  { %4328 = shalt.err (!%p4325_p4)
}
 0x5b7   :  { %s4329_s29 = scalar_lea.hbm %s5940_s11, 32 }
 0x5b8   :  { %p4330_p5 = scmp.ne.s32.totalorder %s5940_s11, %s4329_s29  ;;  %p4333_p6 = scmp.lt.u32.totalorder %s4329_s29, %s5940_s11 }
 0x5ba   :  { %p4335_p7 = pnand %p4333_p6, %p4330_p5 }
 0x5bc   :  { %4338 = shalt.err (!%p4335_p7)
}
 0x5bd   :  { %2953 = dma.vmem_to_hbm [thread:$0]  %s2951_s25, 32, %s5940_s11, [#allocation3]  }
 0x5be   :  { %4339 = dma.done.wait [#allocation3], 32  }
 0x5bf   :  { %4340 = vsyncadd [#allocation3], 4294967264 }
 0x5c0   :  { %2957 = vsyncpa [#allocation3], 1 }

</bundles_post_ra>
